<compile_context>
chip_gen: v5e
topology: v5e:2x2
jax: 0.10.0
libtpu: 0.0.40
codegen_flags: <defaults>
</compile_context>

<pallas_src>
import functools

import jax
import jax.numpy as jnp
from jax import lax
from jax.experimental import pallas as pl
from jax.experimental.pallas import tpu as pltpu


def _bilinear_matrix(n_in, n_out):
    # torch.nn.UpsamplingBilinear2d == F.interpolate(..., align_corners=True)
    if n_out == 1:
        src = jnp.zeros((1,), jnp.float32)
    else:
        src = jnp.arange(n_out, dtype=jnp.float32) * (n_in - 1) / (n_out - 1)
    i0 = jnp.clip(jnp.floor(src).astype(jnp.int32), 0, n_in - 1)
    i1 = jnp.clip(i0 + 1, 0, n_in - 1)
    frac = src - i0.astype(jnp.float32)
    A = jnp.zeros((n_out, n_in), jnp.float32)
    A = A.at[jnp.arange(n_out), i0].add(1.0 - frac)
    A = A.at[jnp.arange(n_out), i1].add(frac)
    return A


def _largest_divisor_leq(n, cap):
    best = 1
    for c in range(1, n + 1):
        if n % c == 0 and c <= cap:
            best = c
    return best


def _upsample_lite_kernel(NT, H, W, Cin,
                          xp_ref, dw_wt_ref, dw_bt_ref, mp_ref, pw_bt_ref,
                          mw_ref, ahb_ref, out_ref, y_scr):
    # xp_ref : (NT, 5, H+4, W*Cin) bf16   dw-pre-shifted padded input planes
    # dw_wt  : (25, W*Cin)  f32           depthwise weights, BN scale folded
    # dw_bt  : (1, W*Cin)   f32           depthwise-branch folded BN bias
    # mp     : (W*Cin, W*Cout)   bf16     I_W (x) (pw_w * pw_scale)
    # pw_bt  : (1, W*Cout)  f32           pointwise-branch folded BN bias
    # mw     : (W*Cout, 2W*Cout) bf16     aw^T (x) I_Cout   (W-dir upsample)
    # ahb    : (NT*2H, NT*H)     bf16     I_NT (x) ah       (H-dir upsample)
    # out    : (NT*2H, 2W*Cout)  bf16     lane-dense output slab
    # y_scr  : (NT*H, W*Cin)     f32      depthwise-stage output (M-batched)
    WC = W * Cin

    # Load the 25 per-tap weight rows once; reused for all NT images.
    wt = [dw_wt_ref[k, :] for k in range(25)]
    dw_b = dw_bt_ref[0, :]

    # ---- depthwise 5x5 conv + folded BN + ReLU6 (f32 on the VPU) ----
    # Each dw-plane is a lane-offset-0 slab; only cheap sublane (dh) shifts
    # remain.  The explicit astype keeps the VPU path f32 on all generations.
    for n in range(NT):
        acc = jnp.zeros((H, WC), jnp.float32)
        for dw in range(5):
            plane = xp_ref[n, dw].astype(jnp.float32)      # (H+4, WC)
            for dh in range(5):
                acc = acc + plane[dh:dh + H, :] * wt[dh * 5 + dw]
        y_scr[n * H:(n + 1) * H, :] = jnp.clip(acc + dw_b, 0.0, 6.0)

    y = y_scr[...]                                          # (NT*H, W*Cin) f32

    # ---- pointwise 1x1 conv + folded BN + ReLU6 (bf16 MXU, f32 acc) ----
    y2 = jnp.dot(y.astype(jnp.bfloat16), mp_ref[...],
                 preferred_element_type=jnp.float32)        # (NT*H, W*Cout)
    y2 = jnp.clip(y2 + pw_bt_ref[0, :], 0.0, 6.0)

    # ---- bilinear 2x upsample (align_corners=True): two lane-dense matmuls ----
    t = jnp.dot(y2.astype(jnp.bfloat16), mw_ref[...],
                preferred_element_type=jnp.float32)         # (NT*H, 2W*Cout)
    o = jnp.dot(ahb_ref[...], t.astype(jnp.bfloat16),
                preferred_element_type=jnp.float32)         # (NT*2H, 2W*Cout)
    out_ref[...] = o.astype(out_ref.dtype)


def prepare_constants(params, N, H, W):
    """Input-independent prep: BN folding, per-W tiling, Kronecker / bilinear
    matrices.  Hoisted out of the per-call path; compute once and reuse."""
    Cin = params['dw_w'].shape[2]
    Cout = params['pw_w'].shape[1]
    # Images per grid step, chosen so the matmul M (= NT*H) approaches >=128.
    NT = _largest_divisor_leq(N, max(1, pl.cdiv(128, H)))

    dw_w = params['dw_w'] * params['dw_s'][0]                         # (5,5,Cin)
    dw_wt = jnp.tile(dw_w.reshape(25, 1, Cin), (1, W, 1)).reshape(25, W * Cin)
    dw_bt = jnp.tile(params['dw_b'], (1, W))                          # (1, W*Cin)

    pw_ws = params['pw_w'] * params['pw_s']                           # (Cin, Cout)
    mp = jnp.kron(jnp.eye(W, dtype=jnp.float32), pw_ws).astype(jnp.bfloat16)
    pw_bt = jnp.tile(params['pw_b'], (1, W))                          # (1, W*Cout)

    aw = _bilinear_matrix(W, 2 * W)                                   # (2W, W)
    mw = jnp.kron(aw.T, jnp.eye(Cout, dtype=jnp.float32)).astype(jnp.bfloat16)
    ah = _bilinear_matrix(H, 2 * H)                                   # (2H, H)
    ahb = jnp.kron(jnp.eye(NT, dtype=jnp.float32), ah).astype(jnp.bfloat16)

    return dict(dw_wt=dw_wt, dw_bt=dw_bt, mp=mp, pw_bt=pw_bt, mw=mw, ahb=ahb)


@jax.jit
def upsample_lite(x_nchw, consts):
    """x_nchw: (N, Cin, H, W) float32 -> (N, Cout, 2H, 2W) float32."""
    N, Cin, H, W = x_nchw.shape
    Cout = consts['pw_bt'].shape[1] // W
    NT = consts['ahb'].shape[0] // (2 * H)
    assert N % NT == 0

    # Boundary layout plumbing (XLA side): NCHW -> NHWC, pad=2 for the 5x5
    # conv, pre-shift into 5 dw-planes, pack (W, Cin) into lanes, bf16 at HBM.
    # TODO(synk): at production scale consume/produce NHWC end-to-end and fold
    # the padding into the kernel's index_map to avoid extra HBM round trips.
    x = jnp.transpose(x_nchw, (0, 2, 3, 1))                           # NHWC
    xp = jnp.pad(x, ((0, 0), (2, 2), (2, 2), (0, 0)))                 # (N,H+4,W+4,Cin)
    planes = jnp.stack([xp[:, :, dw:dw + W, :] for dw in range(5)], axis=1)
    xp_planes = planes.reshape(N, 5, H + 4, W * Cin).astype(jnp.bfloat16)

    kernel = functools.partial(_upsample_lite_kernel, NT, H, W, Cin)

    flops = (2 * N * H * W * Cin * 25
             + 2 * (N * H) * (W * Cin) * (W * Cout)
             + 2 * (N * H) * (W * Cout) * (2 * W * Cout)
             + 2 * (N // NT) * (NT * 2 * H) * (NT * H) * (2 * W * Cout))
    bytes_accessed = (xp_planes.size * 2
                      + N * 2 * H * 2 * W * Cout * 2
                      + (consts['mp'].size + consts['mw'].size
                         + consts['ahb'].size) * 2
                      + (consts['dw_wt'].size + consts['dw_bt'].size
                         + consts['pw_bt'].size) * 4)

    out_flat = pl.pallas_call(
        kernel,
        out_shape=jax.ShapeDtypeStruct((N * 2 * H, 2 * W * Cout), jnp.bfloat16),
        grid_spec=pltpu.PrefetchScalarGridSpec(
            num_scalar_prefetch=0,
            grid=(N // NT,),
            in_specs=[
                pl.BlockSpec((NT, 5, H + 4, W * Cin), lambda g: (g, 0, 0, 0)),
                pl.BlockSpec((25, W * Cin), lambda g: (0, 0)),
                pl.BlockSpec((1, W * Cin), lambda g: (0, 0)),
                pl.BlockSpec((W * Cin, W * Cout), lambda g: (0, 0)),
                pl.BlockSpec((1, W * Cout), lambda g: (0, 0)),
                pl.BlockSpec((W * Cout, 2 * W * Cout), lambda g: (0, 0)),
                pl.BlockSpec((NT * 2 * H, NT * H), lambda g: (0, 0)),
            ],
            out_specs=pl.BlockSpec((NT * 2 * H, 2 * W * Cout), lambda g: (g, 0)),
            scratch_shapes=[pltpu.VMEM((NT * H, W * Cin), jnp.float32)],
        ),
        compiler_params=pltpu.CompilerParams(
            dimension_semantics=("parallel",)),
        cost_estimate=pl.CostEstimate(flops=int(flops), transcendentals=0,
                                      bytes_accessed=int(bytes_accessed)),
    )(xp_planes, consts['dw_wt'], consts['dw_bt'], consts['mp'],
      consts['pw_bt'], consts['mw'], consts['ahb'])

    out = out_flat.reshape(N, 2 * H, 2 * W, Cout).astype(jnp.float32)
    return jnp.transpose(out, (0, 3, 1, 2))                           # -> NCHW


def init_params(key, cin, cout):
    ks = jax.random.split(key, 10)
    dw_w = 0.1 * jax.random.normal(ks[0], (5, 5, cin), jnp.float32)
    pw_w = 0.1 * jax.random.normal(ks[1], (cin, cout), jnp.float32)

    def fold_bn(kg, kb, km, kv, c):
        gamma = 1.0 + 0.1 * jax.random.normal(kg, (c,), jnp.float32)
        beta = 0.1 * jax.random.normal(kb, (c,), jnp.float32)
        mean = 0.1 * jax.random.normal(km, (c,), jnp.float32)
        var = jnp.abs(jax.random.normal(kv, (c,), jnp.float32)) + 1.0
        s = gamma / jnp.sqrt(var + 1e-5)
        b = beta - mean * s
        return s.reshape(1, c), b.reshape(1, c)

    dw_s, dw_b = fold_bn(ks[2], ks[3], ks[4], ks[5], cin)
    pw_s, pw_b = fold_bn(ks[6], ks[7], ks[8], ks[9], cout)
    return dict(dw_w=dw_w, dw_s=dw_s, dw_b=dw_b,
                pw_w=pw_w, pw_s=pw_s, pw_b=pw_b)


def reference(x_nchw, params):
    # Pure-JAX f32 reference for correctness checking.
    x = jnp.transpose(x_nchw, (0, 2, 3, 1))
    N, H, W, Cin = x.shape
    w = params['dw_w'].reshape(5, 5, 1, Cin)
    y = lax.conv_general_dilated(
        x, w, window_strides=(1, 1), padding='SAME',
        dimension_numbers=('NHWC', 'HWIO', 'NHWC'),
        feature_group_count=Cin)
    y = jnp.clip(y * params['dw_s'][0] + params['dw_b'][0], 0.0, 6.0)
    y2 = jnp.einsum('nhwc,cd->nhwd', y, params['pw_w'])
    y2 = jnp.clip(y2 * params['pw_s'][0] + params['pw_b'][0], 0.0, 6.0)
    ah = _bilinear_matrix(H, 2 * H)
    aw = _bilinear_matrix(W, 2 * W)
    o = jnp.einsum('Hh,nhwc,Ww->nHWc', ah, y2, aw)
    return jnp.transpose(o, (0, 3, 1, 2))


if __name__ == "__main__":
    N, Cin, Cout, H, W = 2, 8, 16, 16, 16
    key = jax.random.PRNGKey(0)
    kx, kp = jax.random.split(key)
    x = jax.random.normal(kx, (N, Cin, H, W), jnp.float32)   # NCHW like PyTorch
    params = init_params(kp, Cin, Cout)

    # Input-independent prep done once (not in the per-call path).
    consts = jax.block_until_ready(prepare_constants(params, N, H, W))

    out = jax.block_until_ready(upsample_lite(x, consts))
    assert out.shape == (N, Cout, 2 * H, 2 * W), out.shape

    ref = jax.block_until_ready(reference(x, params))
    err = float(jnp.max(jnp.abs(out - ref)))
    # bf16 MXU operands + bf16 activations at the HBM boundary -> relaxed
    # tolerance vs the f32 reference (values are ReLU6-bounded).
    assert jnp.allclose(out, ref, rtol=2e-2, atol=1e-1), err

    print("KERNEL_OK")
</pallas_src>

<mosaic_0001>
module attributes {stable_mosaic.version = 11 : i64} {
  func.func @_upsample_lite_kernel(%arg0: i32, %arg1: memref<2x5x20x128xbf16, #tpu.memory_space<vmem>>, %arg2: memref<25x128xf32, #tpu.memory_space<vmem>>, %arg3: memref<1x128xf32, #tpu.memory_space<vmem>>, %arg4: memref<128x256xbf16, #tpu.memory_space<vmem>>, %arg5: memref<1x256xf32, #tpu.memory_space<vmem>>, %arg6: memref<256x512xbf16, #tpu.memory_space<vmem>>, %arg7: memref<64x32xbf16, #tpu.memory_space<vmem>>, %arg8: memref<64x512xbf16, #tpu.memory_space<vmem>>, %arg9: memref<32x128xf32, #tpu.memory_space<vmem>>) attributes {dimension_semantics = [#tpu.dimension_semantics<parallel>], iteration_bounds = array<i64: 1>, scalar_prefetch = 0 : i64, scratch_operands = 1 : i64, tpu.core_type = #tpu.core_type<tc>, window_params = [{transform_indices = @transform_0, window_bounds = array<i64: 2, 5, 20, 128>}, {pipeline_mode = #tpu.pipeline_mode<synchronous>, transform_indices = @transform_1, window_bounds = array<i64: 25, 128>}, {pipeline_mode = #tpu.pipeline_mode<synchronous>, transform_indices = @transform_2, window_bounds = array<i64: 1, 128>}, {pipeline_mode = #tpu.pipeline_mode<synchronous>, transform_indices = @transform_3, window_bounds = array<i64: 128, 256>}, {pipeline_mode = #tpu.pipeline_mode<synchronous>, transform_indices = @transform_4, window_bounds = array<i64: 1, 256>}, {pipeline_mode = #tpu.pipeline_mode<synchronous>, transform_indices = @transform_5, window_bounds = array<i64: 256, 512>}, {pipeline_mode = #tpu.pipeline_mode<synchronous>, transform_indices = @transform_6, window_bounds = array<i64: 64, 32>}, {transform_indices = @transform_7, window_bounds = array<i64: 64, 512>}]} {
    %c0 = arith.constant 0 : index
    %c0_0 = arith.constant 0 : index
    %0 = vector.load %arg2[%c0, %c0_0] : memref<25x128xf32, #tpu.memory_space<vmem>>, vector<1x128xf32>
    %1 = vector.shape_cast %0 : vector<1x128xf32> to vector<128xf32>
    %c1 = arith.constant 1 : index
    %c0_1 = arith.constant 0 : index
    %2 = vector.load %arg2[%c1, %c0_1] : memref<25x128xf32, #tpu.memory_space<vmem>>, vector<1x128xf32>
    %3 = vector.shape_cast %2 : vector<1x128xf32> to vector<128xf32>
    %c2 = arith.constant 2 : index
    %c0_2 = arith.constant 0 : index
    %4 = vector.load %arg2[%c2, %c0_2] : memref<25x128xf32, #tpu.memory_space<vmem>>, vector<1x128xf32>
    %5 = vector.shape_cast %4 : vector<1x128xf32> to vector<128xf32>
    %c3 = arith.constant 3 : index
    %c0_3 = arith.constant 0 : index
    %6 = vector.load %arg2[%c3, %c0_3] : memref<25x128xf32, #tpu.memory_space<vmem>>, vector<1x128xf32>
    %7 = vector.shape_cast %6 : vector<1x128xf32> to vector<128xf32>
    %c4 = arith.constant 4 : index
    %c0_4 = arith.constant 0 : index
    %8 = vector.load %arg2[%c4, %c0_4] : memref<25x128xf32, #tpu.memory_space<vmem>>, vector<1x128xf32>
    %9 = vector.shape_cast %8 : vector<1x128xf32> to vector<128xf32>
    %c5 = arith.constant 5 : index
    %c0_5 = arith.constant 0 : index
    %10 = vector.load %arg2[%c5, %c0_5] : memref<25x128xf32, #tpu.memory_space<vmem>>, vector<1x128xf32>
    %11 = vector.shape_cast %10 : vector<1x128xf32> to vector<128xf32>
    %c6 = arith.constant 6 : index
    %c0_6 = arith.constant 0 : index
    %12 = vector.load %arg2[%c6, %c0_6] : memref<25x128xf32, #tpu.memory_space<vmem>>, vector<1x128xf32>
    %13 = vector.shape_cast %12 : vector<1x128xf32> to vector<128xf32>
    %c7 = arith.constant 7 : index
    %c0_7 = arith.constant 0 : index
    %14 = vector.load %arg2[%c7, %c0_7] : memref<25x128xf32, #tpu.memory_space<vmem>>, vector<1x128xf32>
    %15 = vector.shape_cast %14 : vector<1x128xf32> to vector<128xf32>
    %c8 = arith.constant 8 : index
    %c0_8 = arith.constant 0 : index
    %16 = vector.load %arg2[%c8, %c0_8] : memref<25x128xf32, #tpu.memory_space<vmem>>, vector<1x128xf32>
    %17 = vector.shape_cast %16 : vector<1x128xf32> to vector<128xf32>
    %c9 = arith.constant 9 : index
    %c0_9 = arith.constant 0 : index
    %18 = vector.load %arg2[%c9, %c0_9] : memref<25x128xf32, #tpu.memory_space<vmem>>, vector<1x128xf32>
    %19 = vector.shape_cast %18 : vector<1x128xf32> to vector<128xf32>
    %c10 = arith.constant 10 : index
    %c0_10 = arith.constant 0 : index
    %20 = vector.load %arg2[%c10, %c0_10] : memref<25x128xf32, #tpu.memory_space<vmem>>, vector<1x128xf32>
    %21 = vector.shape_cast %20 : vector<1x128xf32> to vector<128xf32>
    %c11 = arith.constant 11 : index
    %c0_11 = arith.constant 0 : index
    %22 = vector.load %arg2[%c11, %c0_11] : memref<25x128xf32, #tpu.memory_space<vmem>>, vector<1x128xf32>
    %23 = vector.shape_cast %22 : vector<1x128xf32> to vector<128xf32>
    %c12 = arith.constant 12 : index
    %c0_12 = arith.constant 0 : index
    %24 = vector.load %arg2[%c12, %c0_12] : memref<25x128xf32, #tpu.memory_space<vmem>>, vector<1x128xf32>
    %25 = vector.shape_cast %24 : vector<1x128xf32> to vector<128xf32>
    %c13 = arith.constant 13 : index
    %c0_13 = arith.constant 0 : index
    %26 = vector.load %arg2[%c13, %c0_13] : memref<25x128xf32, #tpu.memory_space<vmem>>, vector<1x128xf32>
    %27 = vector.shape_cast %26 : vector<1x128xf32> to vector<128xf32>
    %c14 = arith.constant 14 : index
    %c0_14 = arith.constant 0 : index
    %28 = vector.load %arg2[%c14, %c0_14] : memref<25x128xf32, #tpu.memory_space<vmem>>, vector<1x128xf32>
    %29 = vector.shape_cast %28 : vector<1x128xf32> to vector<128xf32>
    %c15 = arith.constant 15 : index
    %c0_15 = arith.constant 0 : index
    %30 = vector.load %arg2[%c15, %c0_15] : memref<25x128xf32, #tpu.memory_space<vmem>>, vector<1x128xf32>
    %31 = vector.shape_cast %30 : vector<1x128xf32> to vector<128xf32>
    %c16 = arith.constant 16 : index
    %c0_16 = arith.constant 0 : index
    %32 = vector.load %arg2[%c16, %c0_16] : memref<25x128xf32, #tpu.memory_space<vmem>>, vector<1x128xf32>
    %33 = vector.shape_cast %32 : vector<1x128xf32> to vector<128xf32>
    %c17 = arith.constant 17 : index
    %c0_17 = arith.constant 0 : index
    %34 = vector.load %arg2[%c17, %c0_17] : memref<25x128xf32, #tpu.memory_space<vmem>>, vector<1x128xf32>
    %35 = vector.shape_cast %34 : vector<1x128xf32> to vector<128xf32>
    %c18 = arith.constant 18 : index
    %c0_18 = arith.constant 0 : index
    %36 = vector.load %arg2[%c18, %c0_18] : memref<25x128xf32, #tpu.memory_space<vmem>>, vector<1x128xf32>
    %37 = vector.shape_cast %36 : vector<1x128xf32> to vector<128xf32>
    %c19 = arith.constant 19 : index
    %c0_19 = arith.constant 0 : index
    %38 = vector.load %arg2[%c19, %c0_19] : memref<25x128xf32, #tpu.memory_space<vmem>>, vector<1x128xf32>
    %39 = vector.shape_cast %38 : vector<1x128xf32> to vector<128xf32>
    %c20 = arith.constant 20 : index
    %c0_20 = arith.constant 0 : index
    %40 = vector.load %arg2[%c20, %c0_20] : memref<25x128xf32, #tpu.memory_space<vmem>>, vector<1x128xf32>
    %41 = vector.shape_cast %40 : vector<1x128xf32> to vector<128xf32>
    %c21 = arith.constant 21 : index
    %c0_21 = arith.constant 0 : index
    %42 = vector.load %arg2[%c21, %c0_21] : memref<25x128xf32, #tpu.memory_space<vmem>>, vector<1x128xf32>
    %43 = vector.shape_cast %42 : vector<1x128xf32> to vector<128xf32>
    %c22 = arith.constant 22 : index
    %c0_22 = arith.constant 0 : index
    %44 = vector.load %arg2[%c22, %c0_22] : memref<25x128xf32, #tpu.memory_space<vmem>>, vector<1x128xf32>
    %45 = vector.shape_cast %44 : vector<1x128xf32> to vector<128xf32>
    %c23 = arith.constant 23 : index
    %c0_23 = arith.constant 0 : index
    %46 = vector.load %arg2[%c23, %c0_23] : memref<25x128xf32, #tpu.memory_space<vmem>>, vector<1x128xf32>
    %47 = vector.shape_cast %46 : vector<1x128xf32> to vector<128xf32>
    %c24 = arith.constant 24 : index
    %c0_24 = arith.constant 0 : index
    %48 = vector.load %arg2[%c24, %c0_24] : memref<25x128xf32, #tpu.memory_space<vmem>>, vector<1x128xf32>
    %49 = vector.shape_cast %48 : vector<1x128xf32> to vector<128xf32>
    %c0_25 = arith.constant 0 : index
    %c0_26 = arith.constant 0 : index
    %50 = vector.load %arg3[%c0_25, %c0_26] : memref<1x128xf32, #tpu.memory_space<vmem>>, vector<1x128xf32>
    %51 = vector.shape_cast %50 : vector<1x128xf32> to vector<128xf32>
    %cst = arith.constant 0.000000e+00 : f32
    %52 = vector.broadcast %cst : f32 to vector<16x128xf32>
    %c0_27 = arith.constant 0 : index
    %c0_28 = arith.constant 0 : index
    %c0_29 = arith.constant 0 : index
    %c0_30 = arith.constant 0 : index
    %53 = vector.load %arg1[%c0_27, %c0_28, %c0_29, %c0_30] : memref<2x5x20x128xbf16, #tpu.memory_space<vmem>>, vector<1x1x20x128xbf16>
    %54 = vector.shape_cast %53 : vector<1x1x20x128xbf16> to vector<20x128xbf16>
    %55 = arith.extf %54 : vector<20x128xbf16> to vector<20x128xf32>
    %56 = vector.extract_strided_slice %55 {offsets = [0, 0], sizes = [16, 128], strides = [1, 1]} : vector<20x128xf32> to vector<16x128xf32>
    %57 = vector.shape_cast %1 : vector<128xf32> to vector<1x128xf32>
    %58 = vector.broadcast %57 : vector<1x128xf32> to vector<16x128xf32>
    %59 = arith.mulf %56, %58 : vector<16x128xf32>
    %60 = arith.addf %52, %59 : vector<16x128xf32>
    %61 = vector.extract_strided_slice %55 {offsets = [1, 0], sizes = [16, 128], strides = [1, 1]} : vector<20x128xf32> to vector<16x128xf32>
    %62 = vector.shape_cast %11 : vector<128xf32> to vector<1x128xf32>
    %63 = vector.broadcast %62 : vector<1x128xf32> to vector<16x128xf32>
    %64 = arith.mulf %61, %63 : vector<16x128xf32>
    %65 = arith.addf %60, %64 : vector<16x128xf32>
    %66 = vector.extract_strided_slice %55 {offsets = [2, 0], sizes = [16, 128], strides = [1, 1]} : vector<20x128xf32> to vector<16x128xf32>
    %67 = vector.shape_cast %21 : vector<128xf32> to vector<1x128xf32>
    %68 = vector.broadcast %67 : vector<1x128xf32> to vector<16x128xf32>
    %69 = arith.mulf %66, %68 : vector<16x128xf32>
    %70 = arith.addf %65, %69 : vector<16x128xf32>
    %71 = vector.extract_strided_slice %55 {offsets = [3, 0], sizes = [16, 128], strides = [1, 1]} : vector<20x128xf32> to vector<16x128xf32>
    %72 = vector.shape_cast %31 : vector<128xf32> to vector<1x128xf32>
    %73 = vector.broadcast %72 : vector<1x128xf32> to vector<16x128xf32>
    %74 = arith.mulf %71, %73 : vector<16x128xf32>
    %75 = arith.addf %70, %74 : vector<16x128xf32>
    %76 = vector.extract_strided_slice %55 {offsets = [4, 0], sizes = [16, 128], strides = [1, 1]} : vector<20x128xf32> to vector<16x128xf32>
    %77 = vector.shape_cast %41 : vector<128xf32> to vector<1x128xf32>
    %78 = vector.broadcast %77 : vector<1x128xf32> to vector<16x128xf32>
    %79 = arith.mulf %76, %78 : vector<16x128xf32>
    %80 = arith.addf %75, %79 : vector<16x128xf32>
    %c0_31 = arith.constant 0 : index
    %c1_32 = arith.constant 1 : index
    %c0_33 = arith.constant 0 : index
    %c0_34 = arith.constant 0 : index
    %81 = vector.load %arg1[%c0_31, %c1_32, %c0_33, %c0_34] : memref<2x5x20x128xbf16, #tpu.memory_space<vmem>>, vector<1x1x20x128xbf16>
    %82 = vector.shape_cast %81 : vector<1x1x20x128xbf16> to vector<20x128xbf16>
    %83 = arith.extf %82 : vector<20x128xbf16> to vector<20x128xf32>
    %84 = vector.extract_strided_slice %83 {offsets = [0, 0], sizes = [16, 128], strides = [1, 1]} : vector<20x128xf32> to vector<16x128xf32>
    %85 = vector.shape_cast %3 : vector<128xf32> to vector<1x128xf32>
    %86 = vector.broadcast %85 : vector<1x128xf32> to vector<16x128xf32>
    %87 = arith.mulf %84, %86 : vector<16x128xf32>
    %88 = arith.addf %80, %87 : vector<16x128xf32>
    %89 = vector.extract_strided_slice %83 {offsets = [1, 0], sizes = [16, 128], strides = [1, 1]} : vector<20x128xf32> to vector<16x128xf32>
    %90 = vector.shape_cast %13 : vector<128xf32> to vector<1x128xf32>
    %91 = vector.broadcast %90 : vector<1x128xf32> to vector<16x128xf32>
    %92 = arith.mulf %89, %91 : vector<16x128xf32>
    %93 = arith.addf %88, %92 : vector<16x128xf32>
    %94 = vector.extract_strided_slice %83 {offsets = [2, 0], sizes = [16, 128], strides = [1, 1]} : vector<20x128xf32> to vector<16x128xf32>
    %95 = vector.shape_cast %23 : vector<128xf32> to vector<1x128xf32>
    %96 = vector.broadcast %95 : vector<1x128xf32> to vector<16x128xf32>
    %97 = arith.mulf %94, %96 : vector<16x128xf32>
    %98 = arith.addf %93, %97 : vector<16x128xf32>
    %99 = vector.extract_strided_slice %83 {offsets = [3, 0], sizes = [16, 128], strides = [1, 1]} : vector<20x128xf32> to vector<16x128xf32>
    %100 = vector.shape_cast %33 : vector<128xf32> to vector<1x128xf32>
    %101 = vector.broadcast %100 : vector<1x128xf32> to vector<16x128xf32>
    %102 = arith.mulf %99, %101 : vector<16x128xf32>
    %103 = arith.addf %98, %102 : vector<16x128xf32>
    %104 = vector.extract_strided_slice %83 {offsets = [4, 0], sizes = [16, 128], strides = [1, 1]} : vector<20x128xf32> to vector<16x128xf32>
    %105 = vector.shape_cast %43 : vector<128xf32> to vector<1x128xf32>
    %106 = vector.broadcast %105 : vector<1x128xf32> to vector<16x128xf32>
    %107 = arith.mulf %104, %106 : vector<16x128xf32>
    %108 = arith.addf %103, %107 : vector<16x128xf32>
    %c0_35 = arith.constant 0 : index
    %c2_36 = arith.constant 2 : index
    %c0_37 = arith.constant 0 : index
    %c0_38 = arith.constant 0 : index
    %109 = vector.load %arg1[%c0_35, %c2_36, %c0_37, %c0_38] : memref<2x5x20x128xbf16, #tpu.memory_space<vmem>>, vector<1x1x20x128xbf16>
    %110 = vector.shape_cast %109 : vector<1x1x20x128xbf16> to vector<20x128xbf16>
    %111 = arith.extf %110 : vector<20x128xbf16> to vector<20x128xf32>
    %112 = vector.extract_strided_slice %111 {offsets = [0, 0], sizes = [16, 128], strides = [1, 1]} : vector<20x128xf32> to vector<16x128xf32>
    %113 = vector.shape_cast %5 : vector<128xf32> to vector<1x128xf32>
    %114 = vector.broadcast %113 : vector<1x128xf32> to vector<16x128xf32>
    %115 = arith.mulf %112, %114 : vector<16x128xf32>
    %116 = arith.addf %108, %115 : vector<16x128xf32>
    %117 = vector.extract_strided_slice %111 {offsets = [1, 0], sizes = [16, 128], strides = [1, 1]} : vector<20x128xf32> to vector<16x128xf32>
    %118 = vector.shape_cast %15 : vector<128xf32> to vector<1x128xf32>
    %119 = vector.broadcast %118 : vector<1x128xf32> to vector<16x128xf32>
    %120 = arith.mulf %117, %119 : vector<16x128xf32>
    %121 = arith.addf %116, %120 : vector<16x128xf32>
    %122 = vector.extract_strided_slice %111 {offsets = [2, 0], sizes = [16, 128], strides = [1, 1]} : vector<20x128xf32> to vector<16x128xf32>
    %123 = vector.shape_cast %25 : vector<128xf32> to vector<1x128xf32>
    %124 = vector.broadcast %123 : vector<1x128xf32> to vector<16x128xf32>
    %125 = arith.mulf %122, %124 : vector<16x128xf32>
    %126 = arith.addf %121, %125 : vector<16x128xf32>
    %127 = vector.extract_strided_slice %111 {offsets = [3, 0], sizes = [16, 128], strides = [1, 1]} : vector<20x128xf32> to vector<16x128xf32>
    %128 = vector.shape_cast %35 : vector<128xf32> to vector<1x128xf32>
    %129 = vector.broadcast %128 : vector<1x128xf32> to vector<16x128xf32>
    %130 = arith.mulf %127, %129 : vector<16x128xf32>
    %131 = arith.addf %126, %130 : vector<16x128xf32>
    %132 = vector.extract_strided_slice %111 {offsets = [4, 0], sizes = [16, 128], strides = [1, 1]} : vector<20x128xf32> to vector<16x128xf32>
    %133 = vector.shape_cast %45 : vector<128xf32> to vector<1x128xf32>
    %134 = vector.broadcast %133 : vector<1x128xf32> to vector<16x128xf32>
    %135 = arith.mulf %132, %134 : vector<16x128xf32>
    %136 = arith.addf %131, %135 : vector<16x128xf32>
    %c0_39 = arith.constant 0 : index
    %c3_40 = arith.constant 3 : index
    %c0_41 = arith.constant 0 : index
    %c0_42 = arith.constant 0 : index
    %137 = vector.load %arg1[%c0_39, %c3_40, %c0_41, %c0_42] : memref<2x5x20x128xbf16, #tpu.memory_space<vmem>>, vector<1x1x20x128xbf16>
    %138 = vector.shape_cast %137 : vector<1x1x20x128xbf16> to vector<20x128xbf16>
    %139 = arith.extf %138 : vector<20x128xbf16> to vector<20x128xf32>
    %140 = vector.extract_strided_slice %139 {offsets = [0, 0], sizes = [16, 128], strides = [1, 1]} : vector<20x128xf32> to vector<16x128xf32>
    %141 = vector.shape_cast %7 : vector<128xf32> to vector<1x128xf32>
    %142 = vector.broadcast %141 : vector<1x128xf32> to vector<16x128xf32>
    %143 = arith.mulf %140, %142 : vector<16x128xf32>
    %144 = arith.addf %136, %143 : vector<16x128xf32>
    %145 = vector.extract_strided_slice %139 {offsets = [1, 0], sizes = [16, 128], strides = [1, 1]} : vector<20x128xf32> to vector<16x128xf32>
    %146 = vector.shape_cast %17 : vector<128xf32> to vector<1x128xf32>
    %147 = vector.broadcast %146 : vector<1x128xf32> to vector<16x128xf32>
    %148 = arith.mulf %145, %147 : vector<16x128xf32>
    %149 = arith.addf %144, %148 : vector<16x128xf32>
    %150 = vector.extract_strided_slice %139 {offsets = [2, 0], sizes = [16, 128], strides = [1, 1]} : vector<20x128xf32> to vector<16x128xf32>
    %151 = vector.shape_cast %27 : vector<128xf32> to vector<1x128xf32>
    %152 = vector.broadcast %151 : vector<1x128xf32> to vector<16x128xf32>
    %153 = arith.mulf %150, %152 : vector<16x128xf32>
    %154 = arith.addf %149, %153 : vector<16x128xf32>
    %155 = vector.extract_strided_slice %139 {offsets = [3, 0], sizes = [16, 128], strides = [1, 1]} : vector<20x128xf32> to vector<16x128xf32>
    %156 = vector.shape_cast %37 : vector<128xf32> to vector<1x128xf32>
    %157 = vector.broadcast %156 : vector<1x128xf32> to vector<16x128xf32>
    %158 = arith.mulf %155, %157 : vector<16x128xf32>
    %159 = arith.addf %154, %158 : vector<16x128xf32>
    %160 = vector.extract_strided_slice %139 {offsets = [4, 0], sizes = [16, 128], strides = [1, 1]} : vector<20x128xf32> to vector<16x128xf32>
    %161 = vector.shape_cast %47 : vector<128xf32> to vector<1x128xf32>
    %162 = vector.broadcast %161 : vector<1x128xf32> to vector<16x128xf32>
    %163 = arith.mulf %160, %162 : vector<16x128xf32>
    %164 = arith.addf %159, %163 : vector<16x128xf32>
    %c0_43 = arith.constant 0 : index
    %c4_44 = arith.constant 4 : index
    %c0_45 = arith.constant 0 : index
    %c0_46 = arith.constant 0 : index
    %165 = vector.load %arg1[%c0_43, %c4_44, %c0_45, %c0_46] : memref<2x5x20x128xbf16, #tpu.memory_space<vmem>>, vector<1x1x20x128xbf16>
    %166 = vector.shape_cast %165 : vector<1x1x20x128xbf16> to vector<20x128xbf16>
    %167 = arith.extf %166 : vector<20x128xbf16> to vector<20x128xf32>
    %168 = vector.extract_strided_slice %167 {offsets = [0, 0], sizes = [16, 128], strides = [1, 1]} : vector<20x128xf32> to vector<16x128xf32>
    %169 = vector.shape_cast %9 : vector<128xf32> to vector<1x128xf32>
    %170 = vector.broadcast %169 : vector<1x128xf32> to vector<16x128xf32>
    %171 = arith.mulf %168, %170 : vector<16x128xf32>
    %172 = arith.addf %164, %171 : vector<16x128xf32>
    %173 = vector.extract_strided_slice %167 {offsets = [1, 0], sizes = [16, 128], strides = [1, 1]} : vector<20x128xf32> to vector<16x128xf32>
    %174 = vector.shape_cast %19 : vector<128xf32> to vector<1x128xf32>
    %175 = vector.broadcast %174 : vector<1x128xf32> to vector<16x128xf32>
    %176 = arith.mulf %173, %175 : vector<16x128xf32>
    %177 = arith.addf %172, %176 : vector<16x128xf32>
    %178 = vector.extract_strided_slice %167 {offsets = [2, 0], sizes = [16, 128], strides = [1, 1]} : vector<20x128xf32> to vector<16x128xf32>
    %179 = vector.shape_cast %29 : vector<128xf32> to vector<1x128xf32>
    %180 = vector.broadcast %179 : vector<1x128xf32> to vector<16x128xf32>
    %181 = arith.mulf %178, %180 : vector<16x128xf32>
    %182 = arith.addf %177, %181 : vector<16x128xf32>
    %183 = vector.extract_strided_slice %167 {offsets = [3, 0], sizes = [16, 128], strides = [1, 1]} : vector<20x128xf32> to vector<16x128xf32>
    %184 = vector.shape_cast %39 : vector<128xf32> to vector<1x128xf32>
    %185 = vector.broadcast %184 : vector<1x128xf32> to vector<16x128xf32>
    %186 = arith.mulf %183, %185 : vector<16x128xf32>
    %187 = arith.addf %182, %186 : vector<16x128xf32>
    %188 = vector.extract_strided_slice %167 {offsets = [4, 0], sizes = [16, 128], strides = [1, 1]} : vector<20x128xf32> to vector<16x128xf32>
    %189 = vector.shape_cast %49 : vector<128xf32> to vector<1x128xf32>
    %190 = vector.broadcast %189 : vector<1x128xf32> to vector<16x128xf32>
    %191 = arith.mulf %188, %190 : vector<16x128xf32>
    %192 = arith.addf %187, %191 : vector<16x128xf32>
    %193 = vector.shape_cast %51 : vector<128xf32> to vector<1x128xf32>
    %194 = vector.broadcast %193 : vector<1x128xf32> to vector<16x128xf32>
    %195 = arith.addf %192, %194 : vector<16x128xf32>
    %cst_47 = arith.constant 0.000000e+00 : f32
    %cst_48 = arith.constant 6.000000e+00 : f32
    %196 = vector.broadcast %cst_47 : f32 to vector<16x128xf32>
    %197 = arith.maximumf %196, %195 : vector<16x128xf32>
    %198 = vector.broadcast %cst_48 : f32 to vector<16x128xf32>
    %199 = arith.minimumf %198, %197 : vector<16x128xf32>
    %c0_49 = arith.constant 0 : index
    %c0_50 = arith.constant 0 : index
    %200 = vector.load %arg9[%c0_49, %c0_50] : memref<32x128xf32, #tpu.memory_space<vmem>>, vector<16x128xf32>
    tpu.vector_store %arg9[%c0_49, %c0_50], %199 {strides = array<i32>} : memref<32x128xf32, #tpu.memory_space<vmem>>, vector<16x128xf32>,
    %cst_51 = arith.constant 0.000000e+00 : f32
    %201 = vector.broadcast %cst_51 : f32 to vector<16x128xf32>
    %c1_52 = arith.constant 1 : index
    %c0_53 = arith.constant 0 : index
    %c0_54 = arith.constant 0 : index
    %c0_55 = arith.constant 0 : index
    %202 = vector.load %arg1[%c1_52, %c0_53, %c0_54, %c0_55] : memref<2x5x20x128xbf16, #tpu.memory_space<vmem>>, vector<1x1x20x128xbf16>
    %203 = vector.shape_cast %202 : vector<1x1x20x128xbf16> to vector<20x128xbf16>
    %204 = arith.extf %203 : vector<20x128xbf16> to vector<20x128xf32>
    %205 = vector.extract_strided_slice %204 {offsets = [0, 0], sizes = [16, 128], strides = [1, 1]} : vector<20x128xf32> to vector<16x128xf32>
    %206 = vector.shape_cast %1 : vector<128xf32> to vector<1x128xf32>
    %207 = vector.broadcast %206 : vector<1x128xf32> to vector<16x128xf32>
    %208 = arith.mulf %205, %207 : vector<16x128xf32>
    %209 = arith.addf %201, %208 : vector<16x128xf32>
    %210 = vector.extract_strided_slice %204 {offsets = [1, 0], sizes = [16, 128], strides = [1, 1]} : vector<20x128xf32> to vector<16x128xf32>
    %211 = vector.shape_cast %11 : vector<128xf32> to vector<1x128xf32>
    %212 = vector.broadcast %211 : vector<1x128xf32> to vector<16x128xf32>
    %213 = arith.mulf %210, %212 : vector<16x128xf32>
    %214 = arith.addf %209, %213 : vector<16x128xf32>
    %215 = vector.extract_strided_slice %204 {offsets = [2, 0], sizes = [16, 128], strides = [1, 1]} : vector<20x128xf32> to vector<16x128xf32>
    %216 = vector.shape_cast %21 : vector<128xf32> to vector<1x128xf32>
    %217 = vector.broadcast %216 : vector<1x128xf32> to vector<16x128xf32>
    %218 = arith.mulf %215, %217 : vector<16x128xf32>
    %219 = arith.addf %214, %218 : vector<16x128xf32>
    %220 = vector.extract_strided_slice %204 {offsets = [3, 0], sizes = [16, 128], strides = [1, 1]} : vector<20x128xf32> to vector<16x128xf32>
    %221 = vector.shape_cast %31 : vector<128xf32> to vector<1x128xf32>
    %222 = vector.broadcast %221 : vector<1x128xf32> to vector<16x128xf32>
    %223 = arith.mulf %220, %222 : vector<16x128xf32>
    %224 = arith.addf %219, %223 : vector<16x128xf32>
    %225 = vector.extract_strided_slice %204 {offsets = [4, 0], sizes = [16, 128], strides = [1, 1]} : vector<20x128xf32> to vector<16x128xf32>
    %226 = vector.shape_cast %41 : vector<128xf32> to vector<1x128xf32>
    %227 = vector.broadcast %226 : vector<1x128xf32> to vector<16x128xf32>
    %228 = arith.mulf %225, %227 : vector<16x128xf32>
    %229 = arith.addf %224, %228 : vector<16x128xf32>
    %c1_56 = arith.constant 1 : index
    %c1_57 = arith.constant 1 : index
    %c0_58 = arith.constant 0 : index
    %c0_59 = arith.constant 0 : index
    %230 = vector.load %arg1[%c1_56, %c1_57, %c0_58, %c0_59] : memref<2x5x20x128xbf16, #tpu.memory_space<vmem>>, vector<1x1x20x128xbf16>
    %231 = vector.shape_cast %230 : vector<1x1x20x128xbf16> to vector<20x128xbf16>
    %232 = arith.extf %231 : vector<20x128xbf16> to vector<20x128xf32>
    %233 = vector.extract_strided_slice %232 {offsets = [0, 0], sizes = [16, 128], strides = [1, 1]} : vector<20x128xf32> to vector<16x128xf32>
    %234 = vector.shape_cast %3 : vector<128xf32> to vector<1x128xf32>
    %235 = vector.broadcast %234 : vector<1x128xf32> to vector<16x128xf32>
    %236 = arith.mulf %233, %235 : vector<16x128xf32>
    %237 = arith.addf %229, %236 : vector<16x128xf32>
    %238 = vector.extract_strided_slice %232 {offsets = [1, 0], sizes = [16, 128], strides = [1, 1]} : vector<20x128xf32> to vector<16x128xf32>
    %239 = vector.shape_cast %13 : vector<128xf32> to vector<1x128xf32>
    %240 = vector.broadcast %239 : vector<1x128xf32> to vector<16x128xf32>
    %241 = arith.mulf %238, %240 : vector<16x128xf32>
    %242 = arith.addf %237, %241 : vector<16x128xf32>
    %243 = vector.extract_strided_slice %232 {offsets = [2, 0], sizes = [16, 128], strides = [1, 1]} : vector<20x128xf32> to vector<16x128xf32>
    %244 = vector.shape_cast %23 : vector<128xf32> to vector<1x128xf32>
    %245 = vector.broadcast %244 : vector<1x128xf32> to vector<16x128xf32>
    %246 = arith.mulf %243, %245 : vector<16x128xf32>
    %247 = arith.addf %242, %246 : vector<16x128xf32>
    %248 = vector.extract_strided_slice %232 {offsets = [3, 0], sizes = [16, 128], strides = [1, 1]} : vector<20x128xf32> to vector<16x128xf32>
    %249 = vector.shape_cast %33 : vector<128xf32> to vector<1x128xf32>
    %250 = vector.broadcast %249 : vector<1x128xf32> to vector<16x128xf32>
    %251 = arith.mulf %248, %250 : vector<16x128xf32>
    %252 = arith.addf %247, %251 : vector<16x128xf32>
    %253 = vector.extract_strided_slice %232 {offsets = [4, 0], sizes = [16, 128], strides = [1, 1]} : vector<20x128xf32> to vector<16x128xf32>
    %254 = vector.shape_cast %43 : vector<128xf32> to vector<1x128xf32>
    %255 = vector.broadcast %254 : vector<1x128xf32> to vector<16x128xf32>
    %256 = arith.mulf %253, %255 : vector<16x128xf32>
    %257 = arith.addf %252, %256 : vector<16x128xf32>
    %c1_60 = arith.constant 1 : index
    %c2_61 = arith.constant 2 : index
    %c0_62 = arith.constant 0 : index
    %c0_63 = arith.constant 0 : index
    %258 = vector.load %arg1[%c1_60, %c2_61, %c0_62, %c0_63] : memref<2x5x20x128xbf16, #tpu.memory_space<vmem>>, vector<1x1x20x128xbf16>
    %259 = vector.shape_cast %258 : vector<1x1x20x128xbf16> to vector<20x128xbf16>
    %260 = arith.extf %259 : vector<20x128xbf16> to vector<20x128xf32>
    %261 = vector.extract_strided_slice %260 {offsets = [0, 0], sizes = [16, 128], strides = [1, 1]} : vector<20x128xf32> to vector<16x128xf32>
    %262 = vector.shape_cast %5 : vector<128xf32> to vector<1x128xf32>
    %263 = vector.broadcast %262 : vector<1x128xf32> to vector<16x128xf32>
    %264 = arith.mulf %261, %263 : vector<16x128xf32>
    %265 = arith.addf %257, %264 : vector<16x128xf32>
    %266 = vector.extract_strided_slice %260 {offsets = [1, 0], sizes = [16, 128], strides = [1, 1]} : vector<20x128xf32> to vector<16x128xf32>
    %267 = vector.shape_cast %15 : vector<128xf32> to vector<1x128xf32>
    %268 = vector.broadcast %267 : vector<1x128xf32> to vector<16x128xf32>
    %269 = arith.mulf %266, %268 : vector<16x128xf32>
    %270 = arith.addf %265, %269 : vector<16x128xf32>
    %271 = vector.extract_strided_slice %260 {offsets = [2, 0], sizes = [16, 128], strides = [1, 1]} : vector<20x128xf32> to vector<16x128xf32>
    %272 = vector.shape_cast %25 : vector<128xf32> to vector<1x128xf32>
    %273 = vector.broadcast %272 : vector<1x128xf32> to vector<16x128xf32>
    %274 = arith.mulf %271, %273 : vector<16x128xf32>
    %275 = arith.addf %270, %274 : vector<16x128xf32>
    %276 = vector.extract_strided_slice %260 {offsets = [3, 0], sizes = [16, 128], strides = [1, 1]} : vector<20x128xf32> to vector<16x128xf32>
    %277 = vector.shape_cast %35 : vector<128xf32> to vector<1x128xf32>
    %278 = vector.broadcast %277 : vector<1x128xf32> to vector<16x128xf32>
    %279 = arith.mulf %276, %278 : vector<16x128xf32>
    %280 = arith.addf %275, %279 : vector<16x128xf32>
    %281 = vector.extract_strided_slice %260 {offsets = [4, 0], sizes = [16, 128], strides = [1, 1]} : vector<20x128xf32> to vector<16x128xf32>
    %282 = vector.shape_cast %45 : vector<128xf32> to vector<1x128xf32>
    %283 = vector.broadcast %282 : vector<1x128xf32> to vector<16x128xf32>
    %284 = arith.mulf %281, %283 : vector<16x128xf32>
    %285 = arith.addf %280, %284 : vector<16x128xf32>
    %c1_64 = arith.constant 1 : index
    %c3_65 = arith.constant 3 : index
    %c0_66 = arith.constant 0 : index
    %c0_67 = arith.constant 0 : index
    %286 = vector.load %arg1[%c1_64, %c3_65, %c0_66, %c0_67] : memref<2x5x20x128xbf16, #tpu.memory_space<vmem>>, vector<1x1x20x128xbf16>
    %287 = vector.shape_cast %286 : vector<1x1x20x128xbf16> to vector<20x128xbf16>
    %288 = arith.extf %287 : vector<20x128xbf16> to vector<20x128xf32>
    %289 = vector.extract_strided_slice %288 {offsets = [0, 0], sizes = [16, 128], strides = [1, 1]} : vector<20x128xf32> to vector<16x128xf32>
    %290 = vector.shape_cast %7 : vector<128xf32> to vector<1x128xf32>
    %291 = vector.broadcast %290 : vector<1x128xf32> to vector<16x128xf32>
    %292 = arith.mulf %289, %291 : vector<16x128xf32>
    %293 = arith.addf %285, %292 : vector<16x128xf32>
    %294 = vector.extract_strided_slice %288 {offsets = [1, 0], sizes = [16, 128], strides = [1, 1]} : vector<20x128xf32> to vector<16x128xf32>
    %295 = vector.shape_cast %17 : vector<128xf32> to vector<1x128xf32>
    %296 = vector.broadcast %295 : vector<1x128xf32> to vector<16x128xf32>
    %297 = arith.mulf %294, %296 : vector<16x128xf32>
    %298 = arith.addf %293, %297 : vector<16x128xf32>
    %299 = vector.extract_strided_slice %288 {offsets = [2, 0], sizes = [16, 128], strides = [1, 1]} : vector<20x128xf32> to vector<16x128xf32>
    %300 = vector.shape_cast %27 : vector<128xf32> to vector<1x128xf32>
    %301 = vector.broadcast %300 : vector<1x128xf32> to vector<16x128xf32>
    %302 = arith.mulf %299, %301 : vector<16x128xf32>
    %303 = arith.addf %298, %302 : vector<16x128xf32>
    %304 = vector.extract_strided_slice %288 {offsets = [3, 0], sizes = [16, 128], strides = [1, 1]} : vector<20x128xf32> to vector<16x128xf32>
    %305 = vector.shape_cast %37 : vector<128xf32> to vector<1x128xf32>
    %306 = vector.broadcast %305 : vector<1x128xf32> to vector<16x128xf32>
    %307 = arith.mulf %304, %306 : vector<16x128xf32>
    %308 = arith.addf %303, %307 : vector<16x128xf32>
    %309 = vector.extract_strided_slice %288 {offsets = [4, 0], sizes = [16, 128], strides = [1, 1]} : vector<20x128xf32> to vector<16x128xf32>
    %310 = vector.shape_cast %47 : vector<128xf32> to vector<1x128xf32>
    %311 = vector.broadcast %310 : vector<1x128xf32> to vector<16x128xf32>
    %312 = arith.mulf %309, %311 : vector<16x128xf32>
    %313 = arith.addf %308, %312 : vector<16x128xf32>
    %c1_68 = arith.constant 1 : index
    %c4_69 = arith.constant 4 : index
    %c0_70 = arith.constant 0 : index
    %c0_71 = arith.constant 0 : index
    %314 = vector.load %arg1[%c1_68, %c4_69, %c0_70, %c0_71] : memref<2x5x20x128xbf16, #tpu.memory_space<vmem>>, vector<1x1x20x128xbf16>
    %315 = vector.shape_cast %314 : vector<1x1x20x128xbf16> to vector<20x128xbf16>
    %316 = arith.extf %315 : vector<20x128xbf16> to vector<20x128xf32>
    %317 = vector.extract_strided_slice %316 {offsets = [0, 0], sizes = [16, 128], strides = [1, 1]} : vector<20x128xf32> to vector<16x128xf32>
    %318 = vector.shape_cast %9 : vector<128xf32> to vector<1x128xf32>
    %319 = vector.broadcast %318 : vector<1x128xf32> to vector<16x128xf32>
    %320 = arith.mulf %317, %319 : vector<16x128xf32>
    %321 = arith.addf %313, %320 : vector<16x128xf32>
    %322 = vector.extract_strided_slice %316 {offsets = [1, 0], sizes = [16, 128], strides = [1, 1]} : vector<20x128xf32> to vector<16x128xf32>
    %323 = vector.shape_cast %19 : vector<128xf32> to vector<1x128xf32>
    %324 = vector.broadcast %323 : vector<1x128xf32> to vector<16x128xf32>
    %325 = arith.mulf %322, %324 : vector<16x128xf32>
    %326 = arith.addf %321, %325 : vector<16x128xf32>
    %327 = vector.extract_strided_slice %316 {offsets = [2, 0], sizes = [16, 128], strides = [1, 1]} : vector<20x128xf32> to vector<16x128xf32>
    %328 = vector.shape_cast %29 : vector<128xf32> to vector<1x128xf32>
    %329 = vector.broadcast %328 : vector<1x128xf32> to vector<16x128xf32>
    %330 = arith.mulf %327, %329 : vector<16x128xf32>
    %331 = arith.addf %326, %330 : vector<16x128xf32>
    %332 = vector.extract_strided_slice %316 {offsets = [3, 0], sizes = [16, 128], strides = [1, 1]} : vector<20x128xf32> to vector<16x128xf32>
    %333 = vector.shape_cast %39 : vector<128xf32> to vector<1x128xf32>
    %334 = vector.broadcast %333 : vector<1x128xf32> to vector<16x128xf32>
    %335 = arith.mulf %332, %334 : vector<16x128xf32>
    %336 = arith.addf %331, %335 : vector<16x128xf32>
    %337 = vector.extract_strided_slice %316 {offsets = [4, 0], sizes = [16, 128], strides = [1, 1]} : vector<20x128xf32> to vector<16x128xf32>
    %338 = vector.shape_cast %49 : vector<128xf32> to vector<1x128xf32>
    %339 = vector.broadcast %338 : vector<1x128xf32> to vector<16x128xf32>
    %340 = arith.mulf %337, %339 : vector<16x128xf32>
    %341 = arith.addf %336, %340 : vector<16x128xf32>
    %342 = vector.shape_cast %51 : vector<128xf32> to vector<1x128xf32>
    %343 = vector.broadcast %342 : vector<1x128xf32> to vector<16x128xf32>
    %344 = arith.addf %341, %343 : vector<16x128xf32>
    %cst_72 = arith.constant 0.000000e+00 : f32
    %cst_73 = arith.constant 6.000000e+00 : f32
    %345 = vector.broadcast %cst_72 : f32 to vector<16x128xf32>
    %346 = arith.maximumf %345, %344 : vector<16x128xf32>
    %347 = vector.broadcast %cst_73 : f32 to vector<16x128xf32>
    %348 = arith.minimumf %347, %346 : vector<16x128xf32>
    %c16_74 = arith.constant 16 : index
    %c0_75 = arith.constant 0 : index
    %349 = vector.load %arg9[%c16_74, %c0_75] : memref<32x128xf32, #tpu.memory_space<vmem>>, vector<16x128xf32>
    tpu.vector_store %arg9[%c16_74, %c0_75], %348 {strides = array<i32>} : memref<32x128xf32, #tpu.memory_space<vmem>>, vector<16x128xf32>,
    %c0_76 = arith.constant 0 : index
    %c0_77 = arith.constant 0 : index
    %350 = vector.load %arg9[%c0_76, %c0_77] : memref<32x128xf32, #tpu.memory_space<vmem>>, vector<32x128xf32>
    %351 = arith.truncf %350 : vector<32x128xf32> to vector<32x128xbf16>
    %c0_78 = arith.constant 0 : index
    %c0_79 = arith.constant 0 : index
    %352 = vector.load %arg4[%c0_78, %c0_79] : memref<128x256xbf16, #tpu.memory_space<vmem>>, vector<128x256xbf16>
    %cst_80 = arith.constant dense<0.000000e+00> : vector<32x256xf32>
    %353 = tpu.matmul %351, %352, %cst_80 {dimension_numbers = #tpu.dot_dimension_numbers<[1], [0], [0], [1], [0, 0, 1, 1], [], []>} : vector<32x128xbf16>, vector<128x256xbf16>, vector<32x256xf32> -> vector<32x256xf32>
    %c0_81 = arith.constant 0 : index
    %c0_82 = arith.constant 0 : index
    %354 = vector.load %arg5[%c0_81, %c0_82] : memref<1x256xf32, #tpu.memory_space<vmem>>, vector<1x256xf32>
    %355 = vector.shape_cast %354 : vector<1x256xf32> to vector<256xf32>
    %356 = vector.shape_cast %355 : vector<256xf32> to vector<1x256xf32>
    %357 = vector.broadcast %356 : vector<1x256xf32> to vector<32x256xf32>
    %358 = arith.addf %353, %357 : vector<32x256xf32>
    %cst_83 = arith.constant 0.000000e+00 : f32
    %cst_84 = arith.constant 6.000000e+00 : f32
    %359 = vector.broadcast %cst_83 : f32 to vector<32x256xf32>
    %360 = arith.maximumf %359, %358 : vector<32x256xf32>
    %361 = vector.broadcast %cst_84 : f32 to vector<32x256xf32>
    %362 = arith.minimumf %361, %360 : vector<32x256xf32>
    %363 = arith.truncf %362 : vector<32x256xf32> to vector<32x256xbf16>
    %c0_85 = arith.constant 0 : index
    %c0_86 = arith.constant 0 : index
    %364 = vector.load %arg6[%c0_85, %c0_86] : memref<256x512xbf16, #tpu.memory_space<vmem>>, vector<256x512xbf16>
    %cst_87 = arith.constant dense<0.000000e+00> : vector<32x512xf32>
    %365 = tpu.matmul %363, %364, %cst_87 {dimension_numbers = #tpu.dot_dimension_numbers<[1], [0], [0], [1], [0, 0, 1, 1], [], []>} : vector<32x256xbf16>, vector<256x512xbf16>, vector<32x512xf32> -> vector<32x512xf32>
    %c0_88 = arith.constant 0 : index
    %c0_89 = arith.constant 0 : index
    %366 = vector.load %arg7[%c0_88, %c0_89] : memref<64x32xbf16, #tpu.memory_space<vmem>>, vector<64x32xbf16>
    %367 = arith.truncf %365 : vector<32x512xf32> to vector<32x512xbf16>
    %cst_90 = arith.constant dense<0.000000e+00> : vector<64x512xf32>
    %368 = tpu.matmul %366, %367, %cst_90 {dimension_numbers = #tpu.dot_dimension_numbers<[1], [0], [0], [1], [0, 0, 1, 1], [], []>} : vector<64x32xbf16>, vector<32x512xbf16>, vector<64x512xf32> -> vector<64x512xf32>
    %369 = arith.truncf %368 : vector<64x512xf32> to vector<64x512xbf16>
    %c0_91 = arith.constant 0 : index
    %c0_92 = arith.constant 0 : index
    %370 = vector.load %arg8[%c0_91, %c0_92] : memref<64x512xbf16, #tpu.memory_space<vmem>>, vector<64x512xbf16>
    tpu.vector_store %arg8[%c0_91, %c0_92], %369 {strides = array<i32>} : memref<64x512xbf16, #tpu.memory_space<vmem>>, vector<64x512xbf16>,
    return
  }
  func.func @transform_0(%arg0: i32) -> (i32, i32, i32, i32) {
    %c0_i32 = arith.constant 0 : i32
    %c0_i32_0 = arith.constant 0 : i32
    %c0_i32_1 = arith.constant 0 : i32
    %c0_i32_2 = arith.constant 0 : i32
    return %arg0, %c0_i32, %c0_i32_0, %c0_i32_1 : i32, i32, i32, i32
  }
  func.func @transform_1(%arg0: i32) -> (i32, i32) {
    %c0_i32 = arith.constant 0 : i32
    %c0_i32_0 = arith.constant 0 : i32
    %c0_i32_1 = arith.constant 0 : i32
    return %c0_i32, %c0_i32_0 : i32, i32
  }
  func.func @transform_2(%arg0: i32) -> (i32, i32) {
    %c0_i32 = arith.constant 0 : i32
    %c0_i32_0 = arith.constant 0 : i32
    %c0_i32_1 = arith.constant 0 : i32
    return %c0_i32, %c0_i32_0 : i32, i32
  }
  func.func @transform_3(%arg0: i32) -> (i32, i32) {
    %c0_i32 = arith.constant 0 : i32
    %c0_i32_0 = arith.constant 0 : i32
    %c0_i32_1 = arith.constant 0 : i32
    return %c0_i32, %c0_i32_0 : i32, i32
  }
  func.func @transform_4(%arg0: i32) -> (i32, i32) {
    %c0_i32 = arith.constant 0 : i32
    %c0_i32_0 = arith.constant 0 : i32
    %c0_i32_1 = arith.constant 0 : i32
    return %c0_i32, %c0_i32_0 : i32, i32
  }
  func.func @transform_5(%arg0: i32) -> (i32, i32) {
    %c0_i32 = arith.constant 0 : i32
    %c0_i32_0 = arith.constant 0 : i32
    %c0_i32_1 = arith.constant 0 : i32
    return %c0_i32, %c0_i32_0 : i32, i32
  }
  func.func @transform_6(%arg0: i32) -> (i32, i32) {
    %c0_i32 = arith.constant 0 : i32
    %c0_i32_0 = arith.constant 0 : i32
    %c0_i32_1 = arith.constant 0 : i32
    return %c0_i32, %c0_i32_0 : i32, i32
  }
  func.func @transform_7(%arg0: i32) -> (i32, i32) {
    %c0_i32 = arith.constant 0 : i32
    %c0_i32_0 = arith.constant 0 : i32
    return %arg0, %c0_i32 : i32, i32
  }
}

</mosaic_0001>

<bundles_post_ra>
// kernel: upsample_lite.1
= control target key start
LH: loop header
LB: loop body
LE: loop exit
PB: predicated region body
PF: predicated region fallthrough
CT: control target
= control target key end

     0   :  { %vm71_vm0 = vcmask 1046528   ;;  %vm88_vm1 = vcmask 1045504   ;;  %vm105_vm2 = vcmask 1044480   ;;  %vm122_vm3 = vcmask 1043456   ;;  %s3339_s3 = inlined_call_operand.vmem [shape: bf16[128,256], index: 3, kind: input, shape index: {}]   ;;  %s3340_s1 = inlined_call_operand.vmem [shape: f32[25,128], index: 1, kind: input, shape index: {}]   ;;  %s3341_s0 = inlined_call_operand.vmem [shape: bf16[2,5,20,128], index: 0, kind: input, shape index: {}]   ;;  %s3342_s2 = inlined_call_operand.vmem [shape: f32[1,128], index: 2, kind: input, shape index: {}]   ;;  %s3343_s5 = inlined_call_operand.vmem [shape: bf16[256,512], index: 5, kind: input, shape index: {}]   ;;  %s3344_s4 = inlined_call_operand.vmem [shape: f32[1,256], index: 4, kind: input, shape index: {}]   ;;  %s3345_s6 = inlined_call_operand.vmem [shape: bf16[64,32], index: 6, kind: input, shape index: {}]   ;;  %s3346_s7 = inlined_call_operand.vmem [shape: bf16[64,512], index: 7, kind: output, shape index: {}]  }
   0x1   :  { %v1798_v0 = vld [vmem:[%s3339_s3 + $0x70] sm:$0xf]  ;;  %v2107_v1 = vld [vmem:[%s3339_s3 + $0x74] sm:$0xf0]  ;;  %v2106_v2 = vld [vmem:[%s3339_s3 + $0x74] sm:$0xf] }
   0x2   :  { %v1799_v3 = vor.u32 %v2107_v1, %v1798_v0  ;;  %v1800_v4 = vld [vmem:[%s3339_s3 + $0x78] sm:$0xf0]  ;;  %v1790_v5 = vld [vmem:[%s3339_s3 + $0x60] sm:$0xf]  ;;  %v2105_v6 = vld [vmem:[%s3339_s3 + $0x64] sm:$0xf0] }
   0x3   :  { %v1803_v7 = vor.u32 %v2106_v2, %v1800_v4  ;;  %v2104_v8 = vld [vmem:[%s3339_s3 + $0x64] sm:$0xf]  ;;  %v1792_v9 = vld [vmem:[%s3339_s3 + $0x68] sm:$0xf0]  ;;  %v1791_v10 = vor.u32 %v2105_v6, %v1790_v5  ;;  %v1782_v12 = vld [vmem:[%s3339_s3 + $0x50] sm:$0xf] }
   0x4   :  { %918 = vmatpush.bf16.msra.mxu0 %v1799_v3  ;;  %v1795_v11 = vor.u32 %v2104_v8, %v1792_v9  ;;  %v2103_v13 = vld [vmem:[%s3339_s3 + $0x54] sm:$0xf0]  ;;  %v2102_v14 = vld [vmem:[%s3339_s3 + $0x54] sm:$0xf]  ;;  %v1784_v15 = vld [vmem:[%s3339_s3 + $0x58] sm:$0xf0] }
   0x5   :  { %937 = vmatpush.bf16.msra.mxu1 %v1803_v7  ;;  %v1783_v16 = vor.u32 %v2103_v13, %v1782_v12  ;;  %v1787_v17 = vor.u32 %v2102_v14, %v1784_v15  ;;  %v1774_v18 = vld [vmem:[%s3339_s3 + $0x40] sm:$0xf]  ;;  %v2101_v19 = vld [vmem:[%s3339_s3 + $0x44] sm:$0xf0]  ;;  %v2100_v20 = vld [vmem:[%s3339_s3 + $0x44] sm:$0xf] }
   0x6   :  { %v1776_v21 = vld [vmem:[%s3339_s3 + $0x48] sm:$0xf0]  ;;  %v1766_v22 = vld [vmem:[%s3339_s3 + $0x30] sm:$0xf]  ;;  %v2099_v23 = vld [vmem:[%s3339_s3 + $0x34] sm:$0xf0]  ;;  %v1775_v24 = vor.u32 %v2101_v19, %v1774_v18 }
   0x7   :  { %v2098_v25 = vld [vmem:[%s3339_s3 + $0x34] sm:$0xf]  ;;  %v1768_v26 = vld [vmem:[%s3339_s3 + $0x38] sm:$0xf0]  ;;  %v1779_v27 = vor.u32 %v2100_v20, %v1776_v21  ;;  %v1758_v28 = vld [vmem:[%s3339_s3 + $0x20] sm:$0xf]  ;;  %v1767_v30 = vor.u32 %v2099_v23, %v1766_v22 }
   0x8   :  { %919 = vmatpush.bf16.msra.mxu0 %v1791_v10  ;;  %v2097_v29 = vld [vmem:[%s3339_s3 + $0x24] sm:$0xf0]  ;;  %v2096_v31 = vld [vmem:[%s3339_s3 + $0x24] sm:$0xf]  ;;  %v1760_v32 = vld [vmem:[%s3339_s3 + $0x28] sm:$0xf0]  ;;  %v1771_v33 = vor.u32 %v2098_v25, %v1768_v26 }
   0x9   :  { %938 = vmatpush.bf16.msra.mxu1 %v1795_v11  ;;  %v1750_v34 = vld [vmem:[%s3339_s3 + $0x10] sm:$0xf]  ;;  %v2095_v35 = vld [vmem:[%s3339_s3 + $0x14] sm:$0xf0]  ;;  %v2094_v36 = vld [vmem:[%s3339_s3 + $0x14] sm:$0xf]  ;;  %v1759_v42 = vor.u32 %v2097_v29, %v1758_v28  ;;  %v1763_v45 = vor.u32 %v2096_v31, %v1760_v32 }
   0xa   :  { %v1752_v37 = vld [vmem:[%s3339_s3 + $0x18] sm:$0xf0]  ;;  %v2369_v38 = vld [vmem:[%s3339_s3] sm:$0xf]  ;;  %v2374_v39 = vld [vmem:[%s3339_s3 + $0x4] sm:$0xf0]  ;;  %v1751_v52 = vor.u32 %v2095_v35, %v1750_v34 }
   0xb   :  { %v2379_v40 = vld [vmem:[%s3339_s3 + $0x4] sm:$0xf]  ;;  %v2384_v41 = vld [vmem:[%s3339_s3 + $0x8] sm:$0xf0]  ;;  %v55_v44 = vld [vmem:[%s3341_s0 + $0x8] sm:$0x3]  ;;  %v1755_v53 = vor.u32 %v2094_v36, %v1752_v37  ;;  %v1743_v54 = vor.u32 %v2374_v39, %v2369_v38 }
   0xc   :  { %920 = vmatpush.bf16.msra.mxu0 %v1783_v16  ;;  %v2177_v43 = vld [vmem:[%s3341_s0] sm:$0xff]   ;;  %v58_v48 = vunpack.c.l.bf16 %v55_v44  ;;  %v2405_v51 = vld [vmem:[%s3340_s1 + $0xa] ss:$0 sm:$0xff]  ;;  %v1747_v55 = vor.u32 %v2379_v40, %v2384_v41  ;;  %v2414_v56 = vld [vmem:[%s3340_s1 + $0xf] ss:$0 sm:$0xff]  ;;  %vm1548_vm4 = vcmask 261120  }
   0xd   :  { %939 = vmatpush.bf16.msra.mxu1 %v1787_v17  ;;  %v2178_v46 = vunpack.c.l.bf16 %v2177_v43  ;;  %v2179_v47 = vunpack.c.h.bf16 %v2177_v43  ;;  %v2395_v49 = vld [vmem:[%s3340_s1] ss:$0 sm:$0xff]  ;;  %v2400_v50 = vld [vmem:[%s3340_s1 + $0x5] ss:$0 sm:$0xff]  ;;  %v2429_v5 = vld [vmem:[%s3340_s1 + $0x14] ss:$0 sm:$0xff] }
   0xe   :  { %v67_v61 = vmul.f32 %v2400_v50, %v58_v48  ;;  %v84_v0 = vmul.f32 %v2405_v51, %v58_v48  ;;  %v101_v11 = vmul.f32 %v2414_v56, %v58_v48  ;;  %v1713_v14 = vld [vmem:[%s3341_s0 + $0xc] sm:$0xff]   ;;  %v1715_v19 = vld [vmem:[%s3341_s0 + $0x14] sm:$0x3]  ;;  %v2452_v25 = vld [vmem:[%s3340_s1 + $0x6] ss:$0 sm:$0xff]  ;;  %v118_v28 = vmul.f32 %v2429_v5, %v58_v48 }
   0xf   :  { %v60_v57 = vmul.f32 %v2395_v49, %v2178_v46  ;;  %v61_v58 = vmul.f32 %v2395_v49, %v2179_v47  ;;  %v65_v59 = vmul.f32 %v2400_v50, %v2178_v46  ;;  %v66_v60 = vmul.f32 %v2400_v50, %v2179_v47  ;;  %v2460_v34 = vld [vmem:[%s3340_s1 + $0xb] ss:$0 sm:$0xff]  ;;  %v2468_v43 = vld [vmem:[%s3340_s1 + $0x10] ss:$0 sm:$0xff] }
  0x10   :  { %921 = vmatpush.bf16.msra.mxu0 %v1775_v24  ;;  %v82_v62 = vmul.f32 %v2405_v51, %v2178_v46  ;;  %v83_v63 = vmul.f32 %v2405_v51, %v2179_v47  ;;  %v99_v3 = vmul.f32 %v2414_v56, %v2178_v46  ;;  %v100_v4 = vmul.f32 %v2414_v56, %v2179_v47  ;;  %v2447_v24 = vld [vmem:[%s3340_s1 + $0x1] ss:$0 sm:$0xff] }
  0x11   :  { %940 = vmatpush.bf16.msra.mxu1 %v1779_v27  ;;  %v72_v1 = vrot.slane %v65_v59, 1  ;;  %v73_v2 = vrot.slane %v66_v60, 1  ;;  %v75_v6 = vrot.slane %v67_v61, 1  ;;  %v92_v9 = vrot.slane %v84_v0, 2  ;;  %v2480_v60 = vld [vmem:[%s3340_s1 + $0x15] ss:$0 sm:$0xff] }
  0x12   :  { %v89_v7 = vrot.slane %v82_v62, 2  ;;  %v90_v8 = vrot.slane %v83_v63, 2  ;;  %v106_v12 = vrot.slane %v99_v3, 3  ;;  %v107_v13 = vrot.slane %v100_v4, 3 }
  0x13   :  { %v74_v10 = vsel %vm71_vm0, %v72_v1, %v73_v2  ;;  %v76_v15 = vsel %vm71_vm0, %v73_v2, %v75_v6  ;;  %v109_v22 = vrot.slane %v101_v11, 3  ;;  %v116_v23 = vmul.f32 %v2429_v5, %v2178_v46 }
  0x14   :  { %922 = vmatpush.bf16.msra.mxu0 %v1767_v30  ;;  %v79_v16 = vadd.f32 %v74_v10, %v60_v57  ;;  %v91_v17 = vsel %vm88_vm1, %v89_v7, %v90_v8  ;;  %v93_v18 = vsel %vm88_vm1, %v90_v8, %v92_v9  ;;  %v80_v20 = vadd.f32 %v76_v15, %v61_v58  ;;  %v2196_v10 = vld [vmem:[%s3341_s0 + $0x18] sm:$0xff]   ;;  %v1718_v15 = vld [vmem:[%s3341_s0 + $0x20] sm:$0x3] }
  0x15   :  { %941 = vmatpush.bf16.msra.mxu1 %v1771_v33  ;;  %v108_v21 = vsel %vm105_vm2, %v106_v12, %v107_v13  ;;  %v117_v27 = vmul.f32 %v2429_v5, %v2179_v47  ;;  %v136_v29 = vunpack.c.l.bf16 %v1713_v14  ;;  %v110_v31 = vsel %vm105_vm2, %v107_v13, %v109_v22 }
  0x16   :  { %v96_v26 = vadd.f32 %v91_v17, %v79_v16  ;;  %v97_v30 = vadd.f32 %v93_v18, %v80_v20  ;;  %v123_v32 = vrot.slane %v116_v23, 4  ;;  %v137_v33 = vunpack.c.h.bf16 %v1713_v14  ;;  %v2499_v20 = vld [vmem:[%s3340_s1 + $0x2] ss:$0 sm:$0xff] }
  0x17   :  { %v124_v36 = vrot.slane %v117_v27, 4  ;;  %v126_v37 = vrot.slane %v118_v28, 4  ;;  %v138_v38 = vunpack.c.l.bf16 %v1715_v19  ;;  %v140_v40 = vmul.f32 %v2447_v24, %v136_v29  ;;  %v2511_v28 = vld [vmem:[%s3340_s1 + $0xc] ss:$0 sm:$0xff] }
  0x18   :  { %923 = vmatpush.bf16.msra.mxu0 %v1759_v42  ;;  %v113_v35 = vadd.f32 %v108_v21, %v96_v26  ;;  %v114_v39 = vadd.f32 %v110_v31, %v97_v30  ;;  %v141_v41 = vmul.f32 %v2447_v24, %v137_v33  ;;  %v145_v42 = vmul.f32 %v2452_v25, %v136_v29  ;;  %v2504_v21 = vld [vmem:[%s3340_s1 + $0x7] ss:$0 sm:$0xff] }
  0x19   :  { %942 = vmatpush.bf16.msra.mxu1 %v1763_v45  ;;  %v125_v44 = vsel %vm122_vm3, %v123_v32, %v124_v36  ;;  %v127_v45 = vsel %vm122_vm3, %v124_v36, %v126_v37  ;;  %v146_v46 = vmul.f32 %v2452_v25, %v137_v33  ;;  %v147_v47 = vmul.f32 %v2452_v25, %v138_v38 }
  0x1a   :  { %v130_v48 = vadd.f32 %v125_v44, %v113_v35  ;;  %v162_v58 = vmul.f32 %v2460_v34, %v137_v33  ;;  %v163_v59 = vmul.f32 %v2460_v34, %v138_v38  ;;  %v177_v0 = vmul.f32 %v2468_v43, %v136_v29 }
  0x1b   :  { %v154_v57 = vrot.slane %v147_v47, 1  ;;  %v178_v8 = vmul.f32 %v2468_v43, %v137_v33  ;;  %v179_v9 = vmul.f32 %v2468_v43, %v138_v38  ;;  %v193_v14 = vmul.f32 %v2480_v60, %v136_v29 }
  0x1c   :  { %924 = vmatpush.bf16.msra.mxu0 %v1751_v52  ;;  %v131_v52 = vadd.f32 %v127_v45, %v114_v39  ;;  %v142_v61 = vadd.f32 %v140_v40, %v130_v48  ;;  %v168_v3 = vrot.slane %v162_v58, 2  ;;  %v170_v4 = vrot.slane %v163_v59, 2 }
  0x1d   :  { %943 = vmatpush.bf16.msra.mxu1 %v1755_v53  ;;  %v151_v53 = vrot.slane %v145_v42, 1  ;;  %v183_v13 = vrot.slane %v177_v0, 3  ;;  %v184_v18 = vrot.slane %v178_v8, 3  ;;  %v186_v19 = vrot.slane %v179_v9, 3  ;;  %v2522_v42 = vld [vmem:[%s3340_s1 + $0x11] ss:$0 sm:$0xff] }
  0x1e   :  { %v143_v62 = vadd.f32 %v141_v41, %v131_v52  ;;  %v171_v12 = vsel %vm88_vm1, %v168_v3, %v170_v4  ;;  %v194_v22 = vmul.f32 %v2480_v60, %v137_v33  ;;  %v195_v23 = vmul.f32 %v2480_v60, %v138_v38 }
  0x1f   :  { %v199_v26 = vrot.slane %v193_v14, 4  ;;  %v2182_v27 = vunpack.c.l.bf16 %v2196_v10  ;;  %v187_v30 = vsel %vm105_vm2, %v184_v18, %v186_v19  ;;  %v2183_v31 = vunpack.c.h.bf16 %v2196_v10 }
  0x20   :  { %925 = vmatpush.bf16.msra.mxu0 %v1743_v54  ;;  %v161_v54 = vmul.f32 %v2460_v34, %v136_v29  ;;  %v185_v29 = vsel %vm105_vm2, %v183_v13, %v184_v18  ;;  %v214_v32 = vunpack.c.l.bf16 %v1718_v15  ;;  %v200_v37 = vrot.slane %v194_v22, 4 }
  0x21   :  { %944 = vmatpush.bf16.msra.mxu1 %v1747_v55  ;;  %v152_v55 = vrot.slane %v146_v46, 1  ;;  %v202_v39 = vrot.slane %v195_v23, 4  ;;  %v216_v33 = vmul.f32 %v2499_v20, %v2182_v27  ;;  %v217_v38 = vmul.f32 %v2499_v20, %v2183_v31  ;;  %v1721_v23 = vld [vmem:[%s3341_s0 + $0x2c] sm:$0x3] }
  0x22   :  { %v167_v63 = vrot.slane %v161_v54, 2  ;;  %v221_v40 = vmul.f32 %v2504_v21, %v2182_v27  ;;  %v222_v41 = vmul.f32 %v2504_v21, %v2183_v31  ;;  %v201_v44 = vsel %vm122_vm3, %v199_v26, %v200_v37  ;;  %v2558_v26 = vld [vmem:[%s3340_s1 + $0x8] ss:$0 sm:$0xff] }
  0x23   :  { %v153_v1 = vsel %vm71_vm0, %v151_v53, %v152_v55  ;;  %v155_v2 = vsel %vm71_vm0, %v152_v55, %v154_v57  ;;  %v203_v45 = vsel %vm122_vm3, %v200_v37, %v202_v39  ;;  %v223_v46 = vmul.f32 %v2504_v21, %v214_v32 }
  0x24   :  { %v158_v6 = vadd.f32 %v153_v1, %v142_v61  ;;  %v159_v7 = vadd.f32 %v155_v2, %v143_v62  ;;  %v169_v11 = vsel %vm88_vm1, %v167_v63, %v168_v3  ;;  %v237_v47 = vmul.f32 %v2511_v28, %v2182_v27  ;;  %v2533_v61 = vld [vmem:[%s3340_s1 + $0x16] ss:$0 sm:$0xff] }
  0x25   :  { %v227_v53 = vrot.slane %v221_v40, 1  ;;  %v228_v54 = vrot.slane %v222_v41, 1  ;;  %v230_v55 = vrot.slane %v223_v46, 1  ;;  %v238_v57 = vmul.f32 %v2511_v28, %v2183_v31 }
  0x26   :  { %v174_v16 = vadd.f32 %v169_v11, %v158_v6  ;;  %v175_v17 = vadd.f32 %v171_v12, %v159_v7  ;;  %v239_v58 = vmul.f32 %v2511_v28, %v214_v32  ;;  %v243_v59 = vrot.slane %v237_v47, 2  ;;  %v1719_v11 = vld [vmem:[%s3341_s0 + $0x24] sm:$0xff]  }
  0x27   :  { %v229_v0 = vsel %vm71_vm0, %v227_v53, %v228_v54  ;;  %v253_v1 = vmul.f32 %v2522_v42, %v2182_v27  ;;  %v231_v2 = vsel %vm71_vm0, %v228_v54, %v230_v55  ;;  %v244_v3 = vrot.slane %v238_v57, 2 }
  0x28   :  { %v190_v35 = vadd.f32 %v185_v29, %v174_v16  ;;  %v191_v36 = vadd.f32 %v187_v30, %v175_v17  ;;  %v246_v4 = vrot.slane %v239_v58, 2  ;;  %v254_v6 = vmul.f32 %v2522_v42, %v2183_v31  ;;  %v2549_v16 = vld [vmem:[%s3340_s1 + $0x3] ss:$0 sm:$0xff] }
  0x29   :  { %v255_v9 = vmul.f32 %v2522_v42, %v214_v32  ;;  %v259_v10 = vrot.slane %v253_v1, 3  ;;  %v245_v12 = vsel %vm88_vm1, %v243_v59, %v244_v3  ;;  %v269_v15 = vmul.f32 %v2533_v61, %v2182_v27 }
  0x2a   :  { %v206_v48 = vadd.f32 %v201_v44, %v190_v35  ;;  %v207_v52 = vadd.f32 %v203_v45, %v191_v36  ;;  %v247_v13 = vsel %vm88_vm1, %v244_v3, %v246_v4  ;;  %v260_v14 = vrot.slane %v254_v6, 3  ;;  %v2565_v36 = vld [vmem:[%s3340_s1 + $0xd] ss:$0 sm:$0xff]  ;;  %v2586_v3 = vld [vmem:[%s3340_s1 + $0x17] ss:$0 sm:$0xff] }
  0x2b   :  { %v262_v19 = vrot.slane %v255_v9, 3  ;;  %v270_v22 = vmul.f32 %v2533_v61, %v2183_v31  ;;  %v271_v29 = vmul.f32 %v2533_v61, %v214_v32  ;;  %v275_v30 = vrot.slane %v269_v15, 4 }
  0x2c   :  { %v218_v62 = vadd.f32 %v216_v33, %v206_v48  ;;  %v219_v63 = vadd.f32 %v217_v38, %v207_v52  ;;  %v261_v27 = vsel %vm105_vm2, %v259_v10, %v260_v14  ;;  %v288_v35 = vunpack.c.l.bf16 %v1719_v11  ;;  %v2576_v48 = vld [vmem:[%s3340_s1 + $0x12] ss:$0 sm:$0xff] }
  0x2d   :  { %v263_v31 = vsel %vm105_vm2, %v260_v14, %v262_v19  ;;  %v276_v39 = vrot.slane %v270_v22, 4  ;;  %v289_v33 = vunpack.c.h.bf16 %v1719_v11  ;;  %v278_v40 = vrot.slane %v271_v29, 4  ;;  %v2602_v29 = vld [vmem:[%s3340_s1 + $0x4] ss:$0 sm:$0xff] }
  0x2e   :  { %v234_v7 = vadd.f32 %v229_v0, %v218_v62  ;;  %v235_v8 = vadd.f32 %v231_v2, %v219_v63  ;;  %v290_v41 = vunpack.c.l.bf16 %v1721_v23  ;;  %v292_v44 = vmul.f32 %v2549_v16, %v288_v35 }
  0x2f   :  { %v277_v45 = vsel %vm122_vm3, %v275_v30, %v276_v39  ;;  %v293_v32 = vmul.f32 %v2549_v16, %v289_v33  ;;  %v297_v46 = vmul.f32 %v2558_v26, %v288_v35  ;;  %v298_v47 = vmul.f32 %v2558_v26, %v289_v33 }
  0x30   :  { %v250_v17 = vadd.f32 %v245_v12, %v234_v7  ;;  %v251_v18 = vadd.f32 %v247_v13, %v235_v8  ;;  %v279_v52 = vsel %vm122_vm3, %v276_v39, %v278_v40  ;;  %v299_v54 = vmul.f32 %v2558_v26, %v290_v41  ;;  %v2612_v40 = vld [vmem:[%s3340_s1 + $0x9] ss:$0 sm:$0xff] }
  0x31   :  { %v313_v55 = vmul.f32 %v2565_v36, %v288_v35  ;;  %v303_v58 = vrot.slane %v297_v46, 1  ;;  %v304_v59 = vrot.slane %v298_v47, 1  ;;  %v314_v62 = vmul.f32 %v2565_v36, %v289_v33 }
  0x32   :  { %v266_v37 = vadd.f32 %v261_v27, %v250_v17  ;;  %v267_v38 = vadd.f32 %v263_v31, %v251_v18  ;;  %v306_v0 = vrot.slane %v299_v54, 1  ;;  %v315_v1 = vmul.f32 %v2565_v36, %v290_v41  ;;  %v2197_v18 = vld [vmem:[%s3341_s0 + $0x30] sm:$0xff]  }
  0x33   :  { %v319_v2 = vrot.slane %v313_v55, 2  ;;  %v305_v6 = vsel %vm71_vm0, %v303_v58, %v304_v59  ;;  %v320_v7 = vrot.slane %v314_v62, 2  ;;  %v329_v8 = vmul.f32 %v2576_v48, %v288_v35 }
  0x34   :  { %v282_v53 = vadd.f32 %v277_v45, %v266_v37  ;;  %v283_v57 = vadd.f32 %v279_v52, %v267_v38  ;;  %v307_v9 = vsel %vm71_vm0, %v304_v59, %v306_v0  ;;  %v322_v11 = vrot.slane %v315_v1, 2  ;;  %v1724_v38 = vld [vmem:[%s3341_s0 + $0x38] sm:$0x3]  ;;  %v2630_v0 = vld [vmem:[%s3340_s1 + $0x13] ss:$0 sm:$0xff] }
  0x35   :  { %v330_v12 = vmul.f32 %v2576_v48, %v289_v33  ;;  %v321_v14 = vsel %vm88_vm1, %v319_v2, %v320_v7  ;;  %v331_v15 = vmul.f32 %v2576_v48, %v290_v41  ;;  %v335_v17 = vrot.slane %v329_v8, 3 }
  0x36   :  { %v294_v63 = vadd.f32 %v292_v44, %v282_v53  ;;  %v295_v4 = vadd.f32 %v293_v32, %v283_v57  ;;  %v323_v19 = vsel %vm88_vm1, %v320_v7, %v322_v11  ;;  %v345_v27 = vmul.f32 %v2586_v3, %v288_v35 }
  0x37   :  { %v336_v23 = vrot.slane %v330_v12, 3  ;;  %v338_v31 = vrot.slane %v331_v15, 3  ;;  %v346_v37 = vmul.f32 %v2586_v3, %v289_v33  ;;  %v347_v39 = vmul.f32 %v2586_v3, %v290_v41  ;;  %v2618_v33 = vld [vmem:[%s3340_s1 + $0xe] ss:$0 sm:$0xff]  ;;  %v2639_v15 = vld [vmem:[%s3340_s1 + $0x18] ss:$0 sm:$0xff] }
  0x38   :  { %v310_v10 = vadd.f32 %v305_v6, %v294_v63  ;;  %v311_v13 = vadd.f32 %v307_v9, %v295_v4  ;;  %v351_v44 = vrot.slane %v345_v27, 4  ;;  %v2186_v45 = vunpack.c.l.bf16 %v2197_v18 }
  0x39   :  { %v337_v35 = vsel %vm105_vm2, %v335_v17, %v336_v23  ;;  %v2187_v32 = vunpack.c.h.bf16 %v2197_v18  ;;  %v339_v41 = vsel %vm105_vm2, %v336_v23, %v338_v31  ;;  %v352_v47 = vrot.slane %v346_v37, 4  ;;  %v1725_v37 = vld [vmem:[%s3341_s0 + $0x3c] sm:$0xff]  }
  0x3a   :  { %v326_v22 = vadd.f32 %v321_v14, %v310_v10  ;;  %v327_v30 = vadd.f32 %v323_v19, %v311_v13  ;;  %v354_v52 = vrot.slane %v347_v39, 4  ;;  %v366_v54 = vunpack.c.l.bf16 %v1724_v38 }
  0x3b   :  { %v368_v55 = vmul.f32 %v2602_v29, %v2186_v45  ;;  %v369_v57 = vmul.f32 %v2602_v29, %v2187_v32  ;;  %v353_v58 = vsel %vm122_vm3, %v351_v44, %v352_v47  ;;  %v373_v62 = vmul.f32 %v2612_v40, %v2186_v45 }
  0x3c   :  { %v342_v46 = vadd.f32 %v337_v35, %v326_v22  ;;  %v343_v53 = vadd.f32 %v339_v41, %v327_v30  ;;  %v355_v59 = vsel %vm122_vm3, %v352_v47, %v354_v52  ;;  %v374_v63 = vmul.f32 %v2612_v40, %v2187_v32 }
  0x3d   :  { %v375_v4 = vmul.f32 %v2612_v40, %v366_v54  ;;  %v389_v6 = vmul.f32 %v2618_v33, %v2186_v45  ;;  %v379_v7 = vrot.slane %v373_v62, 1  ;;  %v390_v9 = vmul.f32 %v2618_v33, %v2187_v32 }
  0x3e   :  { %v358_v1 = vadd.f32 %v353_v58, %v342_v46  ;;  %v359_v2 = vadd.f32 %v355_v59, %v343_v53  ;;  %v380_v8 = vrot.slane %v374_v63, 1  ;;  %v391_v10 = vmul.f32 %v2618_v33, %v366_v54  ;;  %v1727_v58 = vld [vmem:[%s3341_s0 + $0x44] sm:$0x3] }
  0x3f   :  { %v382_v13 = vrot.slane %v375_v4, 1  ;;  %v395_v14 = vrot.slane %v389_v6, 2  ;;  %v396_v18 = vrot.slane %v390_v9, 2  ;;  %v405_v22 = vmul.f32 %v2630_v0, %v2186_v45 }
  0x40   :  { %v370_v11 = vadd.f32 %v368_v55, %v358_v1  ;;  %v371_v12 = vadd.f32 %v369_v57, %v359_v2  ;;  %v381_v17 = vsel %vm71_vm0, %v379_v7, %v380_v8  ;;  %v398_v19 = vrot.slane %v391_v10, 2 }
  0x41   :  { %v383_v23 = vsel %vm71_vm0, %v380_v8, %v382_v13  ;;  %v406_v30 = vmul.f32 %v2630_v0, %v2187_v32  ;;  %v407_v31 = vmul.f32 %v2630_v0, %v366_v54  ;;  %v397_v38 = vsel %vm88_vm1, %v395_v14, %v396_v18 }
  0x42   :  { %v386_v27 = vadd.f32 %v381_v17, %v370_v11  ;;  %v387_v39 = vadd.f32 %v383_v23, %v371_v12  ;;  %v399_v35 = vsel %vm88_vm1, %v396_v18, %v398_v19  ;;  %v411_v44 = vrot.slane %v405_v22, 3 }
  0x43   :  { %v412_v46 = vrot.slane %v406_v30, 3  ;;  %v414_v47 = vrot.slane %v407_v31, 3  ;;  %v421_v52 = vmul.f32 %v2639_v15, %v2186_v45  ;;  %v422_v55 = vmul.f32 %v2639_v15, %v2187_v32  ;;  %v2662_v32 = vld [vmem:[%s3342_s2] ss:$0 sm:$0xff] }
  0x44   :  { %v402_v41 = vadd.f32 %v397_v38, %v386_v27  ;;  %v403_v53 = vadd.f32 %v399_v35, %v387_v39  ;;  %v423_v57 = vmul.f32 %v2639_v15, %v366_v54  ;;  %v451_v59 = vunpack.c.l.bf16 %v1725_v37 }
  0x45   :  { %v413_v62 = vsel %vm105_vm2, %v411_v44, %v412_v46  ;;  %v415_v63 = vsel %vm105_vm2, %v412_v46, %v414_v47  ;;  %v427_v1 = vrot.slane %v421_v52, 4  ;;  %v452_v2 = vunpack.c.h.bf16 %v1725_v37 }
  0x46   :  { %v418_v4 = vadd.f32 %v413_v62, %v402_v41  ;;  %v419_v6 = vadd.f32 %v415_v63, %v403_v53  ;;  %v428_v7 = vrot.slane %v422_v55, 4  ;;  %v430_v45 = vrot.slane %v423_v57, 4  ;;  %v2198_v62 = vld [vmem:[%s3341_s0 + $0x48] sm:$0xff]  }
  0x47   :  { %v453_v54 = vunpack.c.l.bf16 %v1727_v58  ;;  %v454_v8 = vmul.f32 %v2395_v49, %v451_v59  ;;  %v455_v9 = vmul.f32 %v2395_v49, %v452_v2  ;;  %v458_v10 = vmul.f32 %v2400_v50, %v451_v59 }
  0x48   :  { %v429_v11 = vsel %vm122_vm3, %v427_v1, %v428_v7  ;;  %v431_v12 = vsel %vm122_vm3, %v428_v7, %v430_v45  ;;  %v459_v13 = vmul.f32 %v2400_v50, %v452_v2  ;;  %v473_v14 = vmul.f32 %v2405_v51, %v451_v59 }
  0x49   :  { %v434_v17 = vadd.f32 %v429_v11, %v418_v4  ;;  %v435_v18 = vadd.f32 %v431_v12, %v419_v6  ;;  %v460_v19 = vmul.f32 %v2400_v50, %v453_v54  ;;  %v464_v22 = vrot.slane %v458_v10, 1 }
  0x4a   :  { %v465_v23 = vrot.slane %v459_v13, 1  ;;  %v474_v27 = vmul.f32 %v2405_v51, %v452_v2  ;;  %v475_v49 = vmul.f32 %v2405_v51, %v453_v54  ;;  %v479_v30 = vrot.slane %v473_v14, 2 }
  0x4b   :  { %v439_v31 = vadd.f32 %v2662_v32, %v434_v17  ;;  %v440_v37 = vadd.f32 %v2662_v32, %v435_v18  ;;  %v467_v39 = vrot.slane %v460_v19, 1  ;;  %v488_v38 = vmul.f32 %v2414_v56, %v451_v59 }
  0x4c   :  { %v466_v35 = vsel %vm71_vm0, %v464_v22, %v465_v23  ;;  %v480_v44 = vrot.slane %v474_v27, 2  ;;  %v482_v41 = vrot.slane %v475_v49, 2  ;;  %v489_v50 = vmul.f32 %v2414_v56, %v452_v2 }
  0x4d   :  { %v441_v46 = vmax.f32 %v439_v31, 0.0  ;;  %v442_v47 = vmax.f32 %v440_v37, 0.0  ;;  %v468_v52 = vsel %vm71_vm0, %v465_v23, %v467_v39  ;;  %v471_v53 = vadd.f32 %v466_v35, %v454_v8 }
  0x4e   :  { %v472_v51 = vadd.f32 %v468_v52, %v455_v9  ;;  %v481_v55 = vsel %vm88_vm1, %v479_v30, %v480_v44  ;;  %v483_v57 = vsel %vm88_vm1, %v480_v44, %v482_v41  ;;  %v490_v58 = vmul.f32 %v2414_v56, %v453_v54  ;;  %v1730_v56 = vld [vmem:[%s3341_s0 + $0x50] sm:$0x3] }
  0x4f   :  { %v443_v63 = vmin.f32 %v441_v46, 6.0  ;;  %v444_v1 = vmin.f32 %v442_v47, 6.0  ;;  %v486_v4 = vadd.f32 %v481_v55, %v471_v53  ;;  %v494_v6 = vrot.slane %v488_v38, 3 }
  0x50   :  { %v487_v7 = vadd.f32 %v483_v57, %v472_v51  ;;  %v495_v45 = vrot.slane %v489_v50, 3  ;;  %v497_v10 = vrot.slane %v490_v58, 3  ;;  %v503_v8 = vmul.f32 %v2429_v5, %v451_v59 }
  0x51   :  { %v814_v9 = vpack.c.bf16 %v444_v1, %v443_v63  ;;  %v504_v11 = vmul.f32 %v2429_v5, %v452_v2  ;;  %v505_v12 = vmul.f32 %v2429_v5, %v453_v54  ;;  %v2190_v13 = vunpack.c.l.bf16 %v2198_v62 }
  0x52   :  { %v496_v14 = vsel %vm105_vm2, %v494_v6, %v495_v45  ;;  %v498_v17 = vsel %vm105_vm2, %v495_v45, %v497_v10  ;;  %v509_v18 = vrot.slane %v503_v8, 4  ;;  %v2191_v19 = vunpack.c.h.bf16 %v2198_v62 }
  0x53   :  { %926 = vmatmul.bf16.vlgmr.msra.gmra.mxu0 %v814_v9  ;;  %945 = vmatmul.bf16.vlgmr.msra.gmra.mxu1 %v814_v9  ;;  %v501_v22 = vadd.f32 %v496_v14, %v486_v4  ;;  %v502_v59 = vadd.f32 %v498_v17, %v487_v7  ;;  %v510_v23 = vrot.slane %v504_v11, 4  ;;  %v512_v27 = vrot.slane %v505_v12, 4 }
  0x54   :  { %v524_v2 = vunpack.c.l.bf16 %v1730_v56  ;;  %v525_v5 = vmul.f32 %v2447_v24, %v2190_v13  ;;  %v526_v54 = vmul.f32 %v2447_v24, %v2191_v19  ;;  %v529_v49 = vmul.f32 %v2452_v25, %v2190_v13 }
  0x55   :  { %v511_v30 = vsel %vm122_vm3, %v509_v18, %v510_v23  ;;  %v513_v31 = vsel %vm122_vm3, %v510_v23, %v512_v27  ;;  %v530_v37 = vmul.f32 %v2452_v25, %v2191_v19  ;;  %v544_v39 = vmul.f32 %v2460_v34, %v2190_v13 }
  0x56   :  { %v516_v38 = vadd.f32 %v511_v30, %v501_v22  ;;  %v517_v35 = vadd.f32 %v513_v31, %v502_v59  ;;  %v531_v44 = vmul.f32 %v2452_v25, %v524_v2  ;;  %v535_v41 = vrot.slane %v529_v49, 1 }
  0x57   :  { %v536_v50 = vrot.slane %v530_v37, 1  ;;  %v545_v46 = vmul.f32 %v2460_v34, %v2191_v19  ;;  %v546_v24 = vmul.f32 %v2460_v34, %v524_v2  ;;  %v550_v47 = vrot.slane %v544_v39, 2  ;;  %v1731_v34 = vld [vmem:[%s3341_s0 + $0x54] sm:$0xff]  }
  0x58   :  { %v527_v52 = vadd.f32 %v525_v5, %v516_v38  ;;  %v528_v53 = vadd.f32 %v526_v54, %v517_v35  ;;  %v538_v51 = vrot.slane %v531_v44, 1  ;;  %v559_v55 = vmul.f32 %v2468_v43, %v2190_v13 }
  0x59   :  { %v537_v57 = vsel %vm71_vm0, %v535_v41, %v536_v50  ;;  %v551_v58 = vrot.slane %v545_v46, 2  ;;  %v553_v62 = vrot.slane %v546_v24, 2  ;;  %v560_v63 = vmul.f32 %v2468_v43, %v2191_v19 }
  0x5a   :  { %v539_v25 = vsel %vm71_vm0, %v536_v50, %v538_v51  ;;  %v542_v1 = vadd.f32 %v537_v57, %v527_v52  ;;  %v561_v4 = vmul.f32 %v2468_v43, %v524_v2  ;;  %v565_v6 = vrot.slane %v559_v55, 3  ;;  %v1733_v43 = vld [vmem:[%s3341_s0 + $0x5c] sm:$0x3] }
  0x5b   :  { %v543_v7 = vadd.f32 %v539_v25, %v528_v53  ;;  %v552_v45 = vsel %vm88_vm1, %v550_v47, %v551_v58  ;;  %v554_v10 = vsel %vm88_vm1, %v551_v58, %v553_v62  ;;  %v566_v8 = vrot.slane %v560_v63, 3 }
  0x5c   :  { %v557_v9 = vadd.f32 %v552_v45, %v542_v1  ;;  %v568_v11 = vrot.slane %v561_v4, 3  ;;  %v574_v12 = vmul.f32 %v2480_v60, %v2190_v13  ;;  %v575_v56 = vmul.f32 %v2480_v60, %v2191_v19 }
  0x5d   :  { %v558_v14 = vadd.f32 %v554_v10, %v543_v7  ;;  %v567_v17 = vsel %vm105_vm2, %v565_v6, %v566_v8  ;;  %v576_v18 = vmul.f32 %v2480_v60, %v524_v2  ;;  %v593_v22 = vunpack.c.l.bf16 %v1731_v34 }
  0x5e   :  { %v569_v59 = vsel %vm105_vm2, %v566_v8, %v568_v11  ;;  %v572_v23 = vadd.f32 %v567_v17, %v557_v9  ;;  %v580_v27 = vrot.slane %v574_v12, 4  ;;  %v581_v5 = vrot.slane %v575_v56, 4  ;;  %v1736_v12 = vld [vmem:[%s3341_s0 + $0x68] sm:$0x3] }
  0x5f   :  { %v573_v54 = vadd.f32 %v569_v59, %v558_v14  ;;  %v583_v49 = vrot.slane %v576_v18, 4  ;;  %v594_v13 = vunpack.c.h.bf16 %v1731_v34  ;;  %v595_v30 = vunpack.c.l.bf16 %v1733_v43 }
  0x60   :  { %v582_v19 = vsel %vm122_vm3, %v580_v27, %v581_v5  ;;  %v596_v31 = vmul.f32 %v2499_v20, %v593_v22  ;;  %v600_v37 = vmul.f32 %v2504_v21, %v593_v22  ;;  %v615_v39 = vmul.f32 %v2511_v28, %v593_v22 }
  0x61   :  { %v584_v60 = vsel %vm122_vm3, %v581_v5, %v583_v49  ;;  %v587_v2 = vadd.f32 %v582_v19, %v572_v23  ;;  %v597_v38 = vmul.f32 %v2499_v20, %v594_v13  ;;  %v601_v35 = vmul.f32 %v2504_v21, %v594_v13 }
  0x62   :  { %v588_v44 = vadd.f32 %v584_v60, %v573_v54  ;;  %v602_v41 = vmul.f32 %v2504_v21, %v595_v30  ;;  %v606_v50 = vrot.slane %v600_v37, 1  ;;  %v616_v46 = vmul.f32 %v2511_v28, %v594_v13 }
  0x63   :  { %v598_v24 = vadd.f32 %v596_v31, %v587_v2  ;;  %v607_v47 = vrot.slane %v601_v35, 1  ;;  %v617_v52 = vmul.f32 %v2511_v28, %v595_v30  ;;  %v621_v53 = vrot.slane %v615_v39, 2  ;;  %v2199_v28 = vld [vmem:[%s3341_s0 + $0x60] sm:$0xff]  }
  0x64   :  { %v599_v51 = vadd.f32 %v597_v38, %v588_v44  ;;  %v609_v55 = vrot.slane %v602_v41, 1  ;;  %v622_v57 = vrot.slane %v616_v46, 2  ;;  %v630_v58 = vmul.f32 %v2522_v42, %v593_v22 }
  0x65   :  { %v608_v20 = vsel %vm71_vm0, %v606_v50, %v607_v47  ;;  %v624_v62 = vrot.slane %v617_v52, 2  ;;  %v631_v63 = vmul.f32 %v2522_v42, %v594_v13  ;;  %v632_v21 = vmul.f32 %v2522_v42, %v595_v30 }
  0x66   :  { %v610_v25 = vsel %vm71_vm0, %v607_v47, %v609_v55  ;;  %v613_v1 = vadd.f32 %v608_v20, %v598_v24  ;;  %v623_v4 = vsel %vm88_vm1, %v621_v53, %v622_v57  ;;  %v636_v6 = vrot.slane %v630_v58, 3 }
  0x67   :  { %v614_v34 = vadd.f32 %v610_v25, %v599_v51  ;;  %v625_v7 = vsel %vm88_vm1, %v622_v57, %v624_v62  ;;  %v637_v45 = vrot.slane %v631_v63, 3  ;;  %v639_v10 = vrot.slane %v632_v21, 3  ;;  %v1737_v63 = vld [vmem:[%s3341_s0 + $0x6c] sm:$0xff]  }
  0x68   :  { %v628_v8 = vadd.f32 %v623_v4, %v613_v1  ;;  %v645_v9 = vmul.f32 %v2533_v61, %v593_v22  ;;  %v646_v42 = vmul.f32 %v2533_v61, %v594_v13  ;;  %v647_v11 = vmul.f32 %v2533_v61, %v595_v30 }
  0x69   :  { %v629_v56 = vadd.f32 %v625_v7, %v614_v34  ;;  %v638_v43 = vsel %vm105_vm2, %v636_v6, %v637_v45  ;;  %v640_v14 = vsel %vm105_vm2, %v637_v45, %v639_v10  ;;  %v2194_v17 = vunpack.c.l.bf16 %v2199_v28  ;;  %v1739_v7 = vld [vmem:[%s3341_s0 + $0x74] sm:$0x3] }
  0x6a   :  { %v643_v18 = vadd.f32 %v638_v43, %v628_v8  ;;  %v651_v59 = vrot.slane %v645_v9, 4  ;;  %v652_v23 = vrot.slane %v646_v42, 4  ;;  %v654_v27 = vrot.slane %v647_v11, 4 }
  0x6b   :  { %v644_v5 = vadd.f32 %v640_v14, %v629_v56  ;;  %v2195_v22 = vunpack.c.h.bf16 %v2199_v28  ;;  %v666_v54 = vunpack.c.l.bf16 %v1736_v12  ;;  %v667_v49 = vmul.f32 %v2549_v16, %v2194_v17 }
  0x6c   :  { %v653_v61 = vsel %vm122_vm3, %v651_v59, %v652_v23  ;;  %v655_v13 = vsel %vm122_vm3, %v652_v23, %v654_v27  ;;  %v671_v30 = vmul.f32 %v2558_v26, %v2194_v17  ;;  %v686_v19 = vmul.f32 %v2565_v36, %v2194_v17 }
  0x6d   :  { %v658_v31 = vadd.f32 %v653_v61, %v643_v18  ;;  %v659_v37 = vadd.f32 %v655_v13, %v644_v5  ;;  %v668_v39 = vmul.f32 %v2549_v16, %v2195_v22  ;;  %v672_v60 = vmul.f32 %v2558_v26, %v2195_v22 }
  0x6e   :  { %v673_v2 = vmul.f32 %v2558_v26, %v666_v54  ;;  %v677_v38 = vrot.slane %v671_v30, 1  ;;  %v687_v35 = vmul.f32 %v2565_v36, %v2195_v22  ;;  %v688_v44 = vmul.f32 %v2565_v36, %v666_v54 }
  0x6f   :  { %v669_v41 = vadd.f32 %v667_v49, %v658_v31  ;;  %v670_v50 = vadd.f32 %v668_v39, %v659_v37  ;;  %v678_v46 = vrot.slane %v672_v60, 1  ;;  %v692_v24 = vrot.slane %v686_v19, 2 }
  0x70   :  { %v680_v47 = vrot.slane %v673_v2, 1  ;;  %v693_v52 = vrot.slane %v687_v35, 2  ;;  %v695_v53 = vrot.slane %v688_v44, 2  ;;  %v701_v51 = vmul.f32 %v2576_v48, %v2194_v17 }
  0x71   :  { %v679_v16 = vsel %vm71_vm0, %v677_v38, %v678_v46  ;;  %v702_v55 = vmul.f32 %v2576_v48, %v2195_v22  ;;  %v703_v26 = vmul.f32 %v2576_v48, %v666_v54  ;;  %v716_v57 = vmul.f32 %v2586_v3, %v2194_v17 }
  0x72   :  { %v681_v58 = vsel %vm71_vm0, %v678_v46, %v680_v47  ;;  %v684_v36 = vadd.f32 %v679_v16, %v669_v41  ;;  %v694_v20 = vsel %vm88_vm1, %v692_v24, %v693_v52  ;;  %v696_v62 = vsel %vm88_vm1, %v693_v52, %v695_v53  ;;  %v2138_v46 = vld [vmem:[%s3343_s5 + $0xec] sm:$0xf0]  ;;  %v2046_v24 = vld [vmem:[%s3343_s5 + $0x1e0] sm:$0xf] }
  0x73   :  { %v685_v21 = vadd.f32 %v681_v58, %v670_v50  ;;  %v707_v25 = vrot.slane %v701_v51, 3  ;;  %v708_v1 = vrot.slane %v702_v55, 3  ;;  %v710_v4 = vrot.slane %v703_v26, 3  ;;  %v2170_v47 = vld [vmem:[%s3343_s5 + $0x1ec] sm:$0xf0] }
  0x74   :  { %v699_v6 = vadd.f32 %v694_v20, %v684_v36  ;;  %v717_v48 = vmul.f32 %v2586_v3, %v2195_v22  ;;  %v718_v28 = vmul.f32 %v2586_v3, %v666_v54  ;;  %v722_v34 = vrot.slane %v716_v57, 4  ;;  %v1920_v55 = vld [vmem:[%s3343_s5 + $0xf0] sm:$0xf0]  ;;  %v2168_v26 = vld [vmem:[%s3343_s5 + $0x1e4] sm:$0xf] }
  0x75   :  { %v700_v45 = vadd.f32 %v696_v62, %v685_v21  ;;  %v709_v10 = vsel %vm105_vm2, %v707_v25, %v708_v1  ;;  %v711_v8 = vsel %vm105_vm2, %v708_v1, %v710_v4  ;;  %v735_v9 = vunpack.c.l.bf16 %v1737_v63  ;;  %v2048_v62 = vld [vmem:[%s3343_s5 + $0x1f0] sm:$0xf0] }
  0x76   :  { %v714_v42 = vadd.f32 %v709_v10, %v699_v6  ;;  %v723_v11 = vrot.slane %v717_v48, 4  ;;  %v725_v12 = vrot.slane %v718_v28, 4  ;;  %v736_v56 = vunpack.c.h.bf16 %v1737_v63  ;;  %v1902_v63 = vld [vmem:[%s3343_s5 + $0xc0] sm:$0xf]  ;;  %v2134_v6 = vld [vmem:[%s3343_s5 + $0xcc] sm:$0xf0] }
  0x77   :  { %v715_v43 = vadd.f32 %v711_v8, %v700_v45  ;;  %v737_v14 = vunpack.c.l.bf16 %v1739_v7  ;;  %v738_v17 = vmul.f32 %v2602_v29, %v735_v9  ;;  %v742_v3 = vmul.f32 %v2612_v40, %v735_v9  ;;  %v2030_v48 = vld [vmem:[%s3343_s5 + $0x1c0] sm:$0xf]  ;;  %v2166_v28 = vld [vmem:[%s3343_s5 + $0x1cc] sm:$0xf0]  ;;  %v1904_v8 = vld [vmem:[%s3343_s5 + $0xd0] sm:$0xf0] }
  0x78   :  { %v724_v18 = vsel %vm122_vm3, %v722_v34, %v723_v11  ;;  %v726_v59 = vsel %vm122_vm3, %v723_v11, %v725_v12  ;;  %v739_v23 = vmul.f32 %v2602_v29, %v736_v56  ;;  %v743_v27 = vmul.f32 %v2612_v40, %v736_v56 }
  0x79   :  { %v729_v5 = vadd.f32 %v724_v18, %v714_v42  ;;  %v730_v22 = vadd.f32 %v726_v59, %v715_v43  ;;  %v744_v54 = vmul.f32 %v2612_v40, %v737_v14  ;;  %v748_v49 = vrot.slane %v742_v3, 1  ;;  %v1918_v40 = vld [vmem:[%s3343_s5 + $0xe0] sm:$0xf]  ;;  %v2032_v43 = vld [vmem:[%s3343_s5 + $0x1d0] sm:$0xf0] }
  0x7a   :  { %v749_v61 = vrot.slane %v743_v27, 1  ;;  %v757_v13 = vmul.f32 %v2618_v33, %v735_v9  ;;  %v758_v30 = vmul.f32 %v2618_v33, %v736_v56  ;;  %v759_v19 = vmul.f32 %v2618_v33, %v737_v14  ;;  %v1886_v59 = vld [vmem:[%s3343_s5 + $0xa0] sm:$0xf] }
  0x7b   :  { %v740_v31 = vadd.f32 %v738_v17, %v729_v5  ;;  %v741_v37 = vadd.f32 %v739_v23, %v730_v22  ;;  %v751_v39 = vrot.slane %v744_v54, 1  ;;  %v772_v60 = vmul.f32 %v2630_v0, %v735_v9  ;;  %v2130_v23 = vld [vmem:[%s3343_s5 + $0xac] sm:$0xf0]  ;;  %v2014_v54 = vld [vmem:[%s3343_s5 + $0x1a0] sm:$0xf] }
  0x7c   :  { %v750_v29 = vsel %vm71_vm0, %v748_v49, %v749_v61  ;;  %v763_v2 = vrot.slane %v757_v13, 2  ;;  %v764_v38 = vrot.slane %v758_v30, 2  ;;  %v766_v35 = vrot.slane %v759_v19, 2  ;;  %v2162_v49 = vld [vmem:[%s3343_s5 + $0x1ac] sm:$0xf0] }
  0x7d   :  { %v752_v44 = vsel %vm71_vm0, %v749_v61, %v751_v39  ;;  %v755_v41 = vadd.f32 %v750_v29, %v740_v31  ;;  %v773_v50 = vmul.f32 %v2630_v0, %v736_v56  ;;  %v774_v33 = vmul.f32 %v2630_v0, %v737_v14  ;;  %v2136_v0 = vld [vmem:[%s3343_s5 + $0xe4] sm:$0xf] }
  0x7e   :  { %v756_v52 = vadd.f32 %v752_v44, %v741_v37  ;;  %v765_v53 = vsel %vm88_vm1, %v763_v2, %v764_v38  ;;  %v767_v51 = vsel %vm88_vm1, %v764_v38, %v766_v35  ;;  %v778_v16 = vrot.slane %v772_v60, 3  ;;  %v2128_v19 = vld [vmem:[%s3343_s5 + $0xa4] sm:$0xf]  ;;  %v1888_v37 = vld [vmem:[%s3343_s5 + $0xb0] sm:$0xf0] }
  0x7f   :  { %v770_v57 = vadd.f32 %v765_v53, %v755_v41  ;;  %v779_v58 = vrot.slane %v773_v50, 3  ;;  %v781_v36 = vrot.slane %v774_v33, 3  ;;  %v787_v20 = vmul.f32 %v2639_v15, %v735_v9  ;;  %v2160_v39 = vld [vmem:[%s3343_s5 + $0x1a4] sm:$0xf]  ;;  %v2016_v60 = vld [vmem:[%s3343_s5 + $0x1b0] sm:$0xf0] }
  0x80   :  { %v771_v21 = vadd.f32 %v767_v51, %v756_v52  ;;  %v788_v25 = vmul.f32 %v2639_v15, %v736_v56  ;;  %v789_v1 = vmul.f32 %v2639_v15, %v737_v14  ;;  %v1919_v4 = vor.u32 %v2138_v46, %v1918_v40  ;;  %v2132_v15 = vld [vmem:[%s3343_s5 + $0xc4] sm:$0xf]  ;;  %v1870_v35 = vld [vmem:[%s3343_s5 + $0x80] sm:$0xf]  ;;  %v2126_v40 = vld [vmem:[%s3343_s5 + $0x8c] sm:$0xf0] }
  0x81   :  { %v780_v34 = vsel %vm105_vm2, %v778_v16, %v779_v58  ;;  %v782_v7 = vsel %vm105_vm2, %v779_v58, %v781_v36  ;;  %v793_v45 = vrot.slane %v787_v20, 4  ;;  %v2047_v10 = vor.u32 %v2170_v47, %v2046_v24  ;;  %v2164_v56 = vld [vmem:[%s3343_s5 + $0x1c4] sm:$0xf]  ;;  %v1998_v44 = vld [vmem:[%s3343_s5 + $0x180] sm:$0xf] }
  0x82   :  { %v785_v9 = vadd.f32 %v780_v34, %v770_v57  ;;  %v786_v42 = vadd.f32 %v782_v7, %v771_v21  ;;  %v794_v11 = vrot.slane %v788_v25, 4  ;;  %v796_v12 = vrot.slane %v789_v1, 4  ;;  %1360 = vmatpush.bf16.msra.mxu2 %v1919_v4  ;;  %v2158_v46 = vld [vmem:[%s3343_s5 + $0x18c] sm:$0xf0]  ;;  %v2124_v24 = vld [vmem:[%s3343_s5 + $0x84] sm:$0xf] }
  0x83   :  { %1379 = vmatpush.bf16.msra.mxu3 %v2047_v10  ;;  %v1923_v14 = vor.u32 %v2136_v0, %v1920_v55  ;;  %v2051_v17 = vor.u32 %v2168_v26, %v2048_v62  ;;  %v1903_v3 = vor.u32 %v2134_v6, %v1902_v63  ;;  %v2031_v18 = vor.u32 %v2166_v28, %v2030_v48  ;;  %v1872_v52 = vld [vmem:[%s3343_s5 + $0x90] sm:$0xf0]  ;;  %v2156_v53 = vld [vmem:[%s3343_s5 + $0x184] sm:$0xf]  ;;  %v1854_v36 = vld [vmem:[%s3343_s5 + $0x60] sm:$0xf] }
  0x84   :  { %v795_v27 = vsel %vm122_vm3, %v793_v45, %v794_v11  ;;  %v797_v5 = vsel %vm122_vm3, %v794_v11, %v796_v12  ;;  %v1907_v22 = vor.u32 %v2132_v15, %v1904_v8  ;;  %v2035_v30 = vor.u32 %v2164_v56, %v2032_v43  ;;  %v2000_v51 = vld [vmem:[%s3343_s5 + $0x190] sm:$0xf0]  ;;  %v2122_v20 = vld [vmem:[%s3343_s5 + $0x6c] sm:$0xf0]  ;;  %v1982_v63 = vld [vmem:[%s3343_s5 + $0x160] sm:$0xf] }
  0x85   :  { %v800_v61 = vadd.f32 %v795_v27, %v785_v9  ;;  %v801_v13 = vadd.f32 %v797_v5, %v786_v42  ;;  %1398 = vmatpush.bf16.msrb.mxu0 %v1923_v14  ;;  %1417 = vmatpush.bf16.msrb.mxu1 %v2051_v17  ;;  %v1887_v31 = vor.u32 %v2130_v23, %v1886_v59  ;;  %v2154_v21 = vld [vmem:[%s3343_s5 + $0x16c] sm:$0xf0]  ;;  %v2120_v25 = vld [vmem:[%s3343_s5 + $0x64] sm:$0xf]  ;;  %v1856_v4 = vld [vmem:[%s3343_s5 + $0x70] sm:$0xf0] }
  0x86   :  { %1361 = vmatpush.bf16.msra.mxu2 %v1903_v3  ;;  %v2015_v38 = vor.u32 %v2162_v49, %v2014_v54  ;;  %v1891_v33 = vor.u32 %v2128_v19, %v1888_v37  ;;  %v1871_v47 = vor.u32 %v2126_v40, %v1870_v35  ;;  %v1999_v55 = vor.u32 %v2158_v46, %v1998_v44  ;;  %v2152_v6 = vld [vmem:[%s3343_s5 + $0x164] sm:$0xf]  ;;  %v1984_v48 = vld [vmem:[%s3343_s5 + $0x170] sm:$0xf0]  ;;  %v1838_v7 = vld [vmem:[%s3343_s5 + $0x40] sm:$0xf] }
  0x87   :  { %v802_v29 = vadd.f32 %v2662_v32, %v800_v61  ;;  %v803_v2 = vadd.f32 %v2662_v32, %v801_v13  ;;  %1380 = vmatpush.bf16.msra.mxu3 %v2031_v18  ;;  %v2019_v32 = vor.u32 %v2160_v39, %v2016_v60  ;;  %v1875_v57 = vor.u32 %v2124_v24, %v1872_v52  ;;  %v2118_v45 = vld [vmem:[%s3343_s5 + $0x4c] sm:$0xf0]  ;;  %v1966_v10 = vld [vmem:[%s3343_s5 + $0x140] sm:$0xf]  ;;  %v2116_v9 = vld [vmem:[%s3343_s5 + $0x44] sm:$0xf] }
  0x88   :  { %v2003_v58 = vor.u32 %v2156_v53, %v2000_v51  ;;  %v1855_v62 = vor.u32 %v2122_v20, %v1854_v36  ;;  %v1983_v1 = vor.u32 %v2154_v21, %v1982_v63  ;;  %v1859_v28 = vor.u32 %v2120_v25, %v1856_v4  ;;  %v2150_v8 = vld [vmem:[%s3343_s5 + $0x14c] sm:$0xf0]  ;;  %v1840_v42 = vld [vmem:[%s3343_s5 + $0x50] sm:$0xf0]  ;;  %v2148_v56 = vld [vmem:[%s3343_s5 + $0x144] sm:$0xf] }
  0x89   :  { %v804_v41 = vmax.f32 %v802_v29, 0.0  ;;  %v805_v50 = vmax.f32 %v803_v2, 0.0  ;;  %1399 = vmatpush.bf16.msrb.mxu0 %v1907_v22  ;;  %1418 = vmatpush.bf16.msrb.mxu1 %v2035_v30  ;;  %v1987_v34 = vor.u32 %v2152_v6, %v1984_v48  ;;  %v1839_v15 = vor.u32 %v2118_v45, %v1838_v7  ;;  %v1968_v43 = vld [vmem:[%s3343_s5 + $0x150] sm:$0xf0]  ;;  %v1822_v17 = vld [vmem:[%s3343_s5 + $0x20] sm:$0xf] }
  0x8a   :  { %1362 = vmatpush.bf16.msra.mxu2 %v1887_v31  ;;  %v1967_v11 = vor.u32 %v2150_v8, %v1966_v10  ;;  %v1843_v12 = vor.u32 %v2116_v9, %v1840_v42  ;;  %v1971_v14 = vor.u32 %v2148_v56, %v1968_v43  ;;  %v2114_v3 = vld [vmem:[%s3343_s5 + $0x2c] sm:$0xf0]  ;;  %v1950_v18 = vld [vmem:[%s3343_s5 + $0x120] sm:$0xf]  ;;  %v2112_v27 = vld [vmem:[%s3343_s5 + $0x24] sm:$0xf] }
  0x8b   :  { %v806_v16 = vmin.f32 %v804_v41, 6.0  ;;  %v807_v0 = vmin.f32 %v805_v50, 6.0  ;;  %1381 = vmatpush.bf16.msra.mxu3 %v2015_v38  ;;  %v1823_v59 = vor.u32 %v2114_v3, %v1822_v17  ;;  %v2146_v23 = vld [vmem:[%s3343_s5 + $0x12c] sm:$0xf0]  ;;  %v1824_v5 = vld [vmem:[%s3343_s5 + $0x30] sm:$0xf0] }
  0x8c   :  { %v1951_v22 = vor.u32 %v2146_v23, %v1950_v18  ;;  %v1827_v54 = vor.u32 %v2112_v27, %v1824_v5  ;;  %v2144_v49 = vld [vmem:[%s3343_s5 + $0x124] sm:$0xf]  ;;  %v1952_v61 = vld [vmem:[%s3343_s5 + $0x130] sm:$0xf0]  ;;  %v1806_v13 = vld [vmem:[%s3343_s5] sm:$0xf] }
  0x8d   :  { %v815_v26 = vpack.c.bf16 %v807_v0, %v806_v16  ;;  %1400 = vmatpush.bf16.msrb.mxu0 %v1891_v33  ;;  %1419 = vmatpush.bf16.msrb.mxu1 %v2019_v32  ;;  %v1955_v30 = vor.u32 %v2144_v49, %v1952_v61  ;;  %v2110_v19 = vld [vmem:[%s3343_s5 + $0xc] sm:$0xf0]  ;;  %v1934_v31 = vld [vmem:[%s3343_s5 + $0x100] sm:$0xf]  ;;  %v2108_v29 = vld [vmem:[%s3343_s5 + $0x4] sm:$0xf] }
  0x8e   :  { %1363 = vmatpush.bf16.msra.mxu2 %v1871_v47  ;;  %v2142_v37 = vld [vmem:[%s3343_s5 + $0x10c] sm:$0xf0]  ;;  %v1807_v39 = vor.u32 %v2110_v19, %v1806_v13  ;;  %v1808_v2 = vld [vmem:[%s3343_s5 + $0x10] sm:$0xf0]  ;;  %v2140_v38 = vld [vmem:[%s3343_s5 + $0x104] sm:$0xf] }
  0x8f   :  { %931 = vmatmul.bf16.gmra.mxu0 %v815_v26  ;;  %950 = vmatmul.bf16.gmra.mxu1 %v815_v26  ;;  %v1935_v60 = vor.u32 %v2142_v37, %v1934_v31  ;;  %v1811_v35 = vor.u32 %v2108_v29, %v1808_v2  ;;  %v1936_v40 = vld [vmem:[%s3343_s5 + $0x110] sm:$0xf0]  ;;  %v832_v41 = vld [vmem:[%s3344_s4] sm:$0x3]  ;;  %v1926_v25 = vld [vmem:[%s3343_s5 + $0xe8] sm:$0xf] }
  0x90   :  { %1382 = vmatpush.bf16.msra.mxu3 %v1999_v55  ;;  %v1939_v44 = vor.u32 %v2140_v38, %v1936_v40  ;;  %v2999_v32 = vperm.slane %v832_v41, 0  ;;  %v3001_v46 = vperm.slane %v832_v41, 1  ;;  %v2054_v4 = vld [vmem:[%s3343_s5 + $0x1e8] sm:$0xf]  ;;  %v2171_v48 = vld [vmem:[%s3343_s5 + $0x1f4] sm:$0xf0] }
  0x91   :  { %1401 = vmatpush.bf16.msrb.mxu0 %v1875_v57  ;;  %1420 = vmatpush.bf16.msrb.mxu1 %v2003_v58  ;;  %v2055_v7 = vor.u32 %v2171_v48, %v2054_v4  ;;  %v2169_v10 = vld [vmem:[%s3343_s5 + $0x1ec] sm:$0xf]  ;;  %v1910_v9 = vld [vmem:[%s3343_s5 + $0xc8] sm:$0xf]  ;;  %v2135_v42 = vld [vmem:[%s3343_s5 + $0xd4] sm:$0xf0] }
  0x92   :  { %1364 = vmatpush.bf16.msra.mxu2 %v1855_v62  ;;  %v2167_v56 = vld [vmem:[%s3343_s5 + $0x1d4] sm:$0xf0]  ;;  %v2133_v43 = vld [vmem:[%s3343_s5 + $0xcc] sm:$0xf]  ;;  %v1894_v27 = vld [vmem:[%s3343_s5 + $0xa8] sm:$0xf] }
  0x93   :  { %v2165_v18 = vld [vmem:[%s3343_s5 + $0x1cc] sm:$0xf]  ;;  %v2131_v5 = vld [vmem:[%s3343_s5 + $0xb4] sm:$0xf0]  ;;  %v1896_v13 = vld [vmem:[%s3343_s5 + $0xb8] sm:$0xf0] }
  0x94   :  { %1383 = vmatpush.bf16.msra.mxu3 %v1983_v1  ;;  %v2139_v1 = vld [vmem:[%s3343_s5 + $0xf4] sm:$0xf0]  ;;  %v2129_v61 = vld [vmem:[%s3343_s5 + $0xac] sm:$0xf]  ;;  %v2024_v37 = vld [vmem:[%s3343_s5 + $0x1b8] sm:$0xf0] }
  0x95   :  { %1402 = vmatpush.bf16.msrb.mxu0 %v1859_v28  ;;  %1421 = vmatpush.bf16.msrb.mxu1 %v1987_v34  ;;  %v1927_v6 = vor.u32 %v2139_v1, %v1926_v25  ;;  %v2137_v28 = vld [vmem:[%s3343_s5 + $0xec] sm:$0xf]  ;;  %v1928_v34 = vld [vmem:[%s3343_s5 + $0xf8] sm:$0xf0]  ;;  %v2163_v49 = vld [vmem:[%s3343_s5 + $0x1b4] sm:$0xf0]  ;;  %v3093_v19 = vor.u32 %v2129_v61, %v1896_v13 }
  0x96   :  { %1365 = vmatpush.bf16.msra.mxu2 %v1839_v15  ;;  %v3033_v45 = vor.u32 %v2137_v28, %v1928_v34  ;;  %v2056_v15 = vld [vmem:[%s3343_s5 + $0x1f8] sm:$0xf0]  ;;  %v2161_v31 = vld [vmem:[%s3343_s5 + $0x1ac] sm:$0xf]  ;;  %v2127_v29 = vld [vmem:[%s3343_s5 + $0x94] sm:$0xf0] }
  0x97   :  { %v3041_v8 = vor.u32 %v2169_v10, %v2056_v15  ;;  %v2006_v2 = vld [vmem:[%s3343_s5 + $0x188] sm:$0xf]  ;;  %v2125_v40 = vld [vmem:[%s3343_s5 + $0x8c] sm:$0xf]  ;;  %v2119_v1 = vld [vmem:[%s3343_s5 + $0x54] sm:$0xf0] }
  0x98   :  { %1384 = vmatpush.bf16.msra.mxu3 %v1967_v11  ;;  %v2038_v11 = vld [vmem:[%s3343_s5 + $0x1c8] sm:$0xf]  ;;  %v2117_v34 = vld [vmem:[%s3343_s5 + $0x4c] sm:$0xf] }
  0x99   :  { %1403 = vmatpush.bf16.msrb.mxu0 %v1843_v12  ;;  %1422 = vmatpush.bf16.msrb.mxu1 %v1971_v14  ;;  %v1911_v12 = vor.u32 %v2135_v42, %v1910_v9  ;;  %v1912_v14 = vld [vmem:[%s3343_s5 + $0xd8] sm:$0xf0]  ;;  %v2039_v17 = vor.u32 %v2167_v56, %v2038_v11  ;;  %v1974_v4 = vld [vmem:[%s3343_s5 + $0x148] sm:$0xf]  ;;  %v2149_v10 = vld [vmem:[%s3343_s5 + $0x14c] sm:$0xf] }
  0x9a   :  { %1366 = vmatpush.bf16.msra.mxu2 %v1823_v59  ;;  %v3063_v3 = vor.u32 %v2133_v43, %v1912_v14  ;;  %v2040_v59 = vld [vmem:[%s3343_s5 + $0x1d8] sm:$0xf0]  ;;  %v1830_v42 = vld [vmem:[%s3343_s5 + $0x28] sm:$0xf]  ;;  %v2115_v11 = vld [vmem:[%s3343_s5 + $0x34] sm:$0xf0] }
  0x9b   :  { %v3071_v23 = vor.u32 %v2165_v18, %v2040_v59  ;;  %v1976_v9 = vld [vmem:[%s3343_s5 + $0x158] sm:$0xf0]  ;;  %v1958_v56 = vld [vmem:[%s3343_s5 + $0x128] sm:$0xf]  ;;  %v2147_v43 = vld [vmem:[%s3343_s5 + $0x134] sm:$0xf0] }
  0x9c   :  { %1385 = vmatpush.bf16.msra.mxu3 %v1951_v22  ;;  %v2022_v22 = vld [vmem:[%s3343_s5 + $0x1a8] sm:$0xf]  ;;  %v2113_v14 = vld [vmem:[%s3343_s5 + $0x2c] sm:$0xf]  ;;  %v1832_v18 = vld [vmem:[%s3343_s5 + $0x38] sm:$0xf0] }
  0x9d   :  { %1404 = vmatpush.bf16.msrb.mxu0 %v1827_v54  ;;  %1423 = vmatpush.bf16.msrb.mxu1 %v1955_v30  ;;  %v1895_v54 = vor.u32 %v2131_v5, %v1894_v27  ;;  %v2023_v30 = vor.u32 %v2163_v49, %v2022_v22  ;;  %v2145_v59 = vld [vmem:[%s3343_s5 + $0x12c] sm:$0xf]  ;;  %v1960_v27 = vld [vmem:[%s3343_s5 + $0x138] sm:$0xf0]  ;;  %v1959_v5 = vor.u32 %v2147_v43, %v1958_v56  ;;  %v2111_v49 = vld [vmem:[%s3343_s5 + $0x14] sm:$0xf0] }
  0x9e   :  { %1367 = vmatpush.bf16.msra.mxu2 %v1807_v39  ;;  %v3101_v39 = vor.u32 %v2161_v31, %v2024_v37  ;;  %v1835_v22 = vor.u32 %v2113_v14, %v1832_v18  ;;  %v1942_v61 = vld [vmem:[%s3343_s5 + $0x108] sm:$0xf]  ;;  %v1963_v13 = vor.u32 %v2145_v59, %v1960_v27  ;;  %v2109_v31 = vld [vmem:[%s3343_s5 + $0xc] sm:$0xf]  ;;  %v1816_v37 = vld [vmem:[%s3343_s5 + $0x18] sm:$0xf0] }
  0x9f   :  { %v2172_v27 = vld [vmem:[%s3345_s6] sm:$0xff] }
  0xa0   :  { %1386 = vmatpush.bf16.msra.mxu3 %v1935_v60  ;;  %v1878_v60 = vld [vmem:[%s3343_s5 + $0x88] sm:$0xf] }
  0xa1   :  { %1405 = vmatpush.bf16.msrb.mxu0 %v1811_v35  ;;  %1424 = vmatpush.bf16.msrb.mxu1 %v1939_v44  ;;  %v1879_v38 = vor.u32 %v2127_v29, %v1878_v60  ;;  %v2159_v35 = vld [vmem:[%s3343_s5 + $0x194] sm:$0xf0]  ;;  %v1880_v44 = vld [vmem:[%s3343_s5 + $0x98] sm:$0xf0]  ;;  %v2141_v60 = vld [vmem:[%s3343_s5 + $0x10c] sm:$0xf] }
  0xa2   :  { %1436 = vmatpush.bf16.msrb.mxu2 %v1927_v6  ;;  %v2007_v41 = vor.u32 %v2159_v35, %v2006_v2  ;;  %v2151_v6 = vld [vmem:[%s3343_s5 + $0x154] sm:$0xf0]  ;;  %v1944_v29 = vld [vmem:[%s3343_s5 + $0x118] sm:$0xf0]  ;;  %v1819_v35 = vor.u32 %v2109_v31, %v1816_v37 }
  0xa3   :  { %v1975_v28 = vor.u32 %v2151_v6, %v1974_v4 }
  0xa4   :  { %1455 = vmatpush.bf16.msrb.mxu3 %v2055_v7  ;;  %v1848_v7 = vld [vmem:[%s3343_s5 + $0x58] sm:$0xf0] }
  0xa5   :  { %1474 = vmatpush.bf16.msra.mxu0 %v3033_v45  ;;  %1493 = vmatpush.bf16.msra.mxu1 %v3041_v8  ;;  %v3186_v15 = vor.u32 %v2117_v34, %v1848_v7 }
  0xa6   :  { %1437 = vmatpush.bf16.msrb.mxu2 %v1911_v12  ;;  %v3197_v12 = vor.u32 %v2149_v10, %v1976_v9 }
  0xa8   :  { %1456 = vmatpush.bf16.msrb.mxu3 %v2039_v17  ;;  %v1831_v17 = vor.u32 %v2115_v11, %v1830_v42 }
  0xa9   :  { %1475 = vmatpush.bf16.msra.mxu0 %v3063_v3  ;;  %1494 = vmatpush.bf16.msra.mxu1 %v3071_v23 }
  0xaa   :  { %1438 = vmatpush.bf16.msrb.mxu2 %v1895_v54  ;;  %v1814_v54 = vld [vmem:[%s3343_s5 + $0x8] sm:$0xf] }
  0xab   :  { %v1815_v2 = vor.u32 %v2111_v49, %v1814_v54 }
  0xac   :  { %1457 = vmatpush.bf16.msrb.mxu3 %v2023_v30  ;;  %v2143_v30 = vld [vmem:[%s3343_s5 + $0x114] sm:$0xf0] }
  0xad   :  { %1476 = vmatpush.bf16.msra.mxu0 %v3093_v19  ;;  %1495 = vmatpush.bf16.msra.mxu1 %v3101_v39 }
  0xae   :  { %1439 = vmatpush.bf16.msrb.mxu2 %v1879_v38  ;;  %v1943_v38 = vor.u32 %v2143_v30, %v1942_v61  ;;  %v2173_v61 = vld [vmem:[%s3345_s6 + $0x8] sm:$0xff] }
  0xb0   :  { %1458 = vmatpush.bf16.msrb.mxu3 %v2007_v41 }
  0xd0   :  { %v927_v50 = vpop.f32.mrf.mxu0  ;;  %v946_v33 = vpop.f32.mrf.mxu1 }
  0xd1   :  { %v928_v24 = vadd.f32 %v927_v50, %v2999_v32  ;;  %v947_v47 = vadd.f32 %v946_v33, %v3001_v46  ;;  %v3123_v50 = vor.u32 %v2125_v40, %v1880_v44  ;;  %v2157_v33 = vld [vmem:[%s3343_s5 + $0x18c] sm:$0xf]  ;;  %v1947_v40 = vor.u32 %v2141_v60, %v1944_v29 }
  0xd3   :  { %v956_v51 = vmax.f32 %v928_v24, 0.0  ;;  %v957_v16 = vmax.f32 %v947_v47, 0.0  ;;  %v2008_v24 = vld [vmem:[%s3343_s5 + $0x198] sm:$0xf0]  ;;  %1477 = vmatpush.bf16.msra.mxu0 %v3123_v50 }
  0xd4   :  { %v3131_v47 = vor.u32 %v2157_v33, %v2008_v24 }
  0xd5   :  { %v964_v58 = vmin.f32 %v956_v51, 6.0  ;;  %v965_v36 = vmin.f32 %v957_v16, 6.0  ;;  %v1990_v51 = vld [vmem:[%s3343_s5 + $0x168] sm:$0xf] }
  0xd6   :  { %1496 = vmatpush.bf16.msra.mxu1 %v3131_v47 }
  0xd8   :  { %v929_v52 = vpop.f32.mrf.mxu0  ;;  %v948_v53 = vpop.f32.mrf.mxu1 }
  0xd9   :  { %v930_v0 = vadd.f32 %v929_v52, %v2999_v32  ;;  %v949_v55 = vadd.f32 %v948_v53, %v3001_v46  ;;  %v1862_v52 = vld [vmem:[%s3343_s5 + $0x68] sm:$0xf]  ;;  %v2123_v53 = vld [vmem:[%s3343_s5 + $0x74] sm:$0xf0] }
  0xda   :  { %v1863_v16 = vor.u32 %v2123_v53, %v1862_v52 }
  0xdb   :  { %v958_v26 = vmax.f32 %v930_v0, 0.0  ;;  %v959_v57 = vmax.f32 %v949_v55, 0.0  ;;  %v2155_v0 = vld [vmem:[%s3343_s5 + $0x174] sm:$0xf0]  ;;  %v2121_v55 = vld [vmem:[%s3343_s5 + $0x6c] sm:$0xf] }
  0xdc   :  { %1440 = vmatpush.bf16.msrb.mxu2 %v1863_v16 }
  0xdd   :  { %v966_v20 = vmin.f32 %v958_v26, 6.0  ;;  %v967_v62 = vmin.f32 %v959_v57, 6.0  ;;  %v1864_v26 = vld [vmem:[%s3343_s5 + $0x78] sm:$0xf0]  ;;  %v1991_v57 = vor.u32 %v2155_v0, %v1990_v51 }
  0xdf   :  { %v3007_v63 = vpack.c.bf16 %v966_v20, %v964_v58  ;;  %v3009_v21 = vpack.c.bf16 %v967_v62, %v965_v36  ;;  %v3153_v58 = vor.u32 %v2121_v55, %v1864_v26  ;;  %v2153_v36 = vld [vmem:[%s3343_s5 + $0x16c] sm:$0xf]  ;;  %v1992_v20 = vld [vmem:[%s3343_s5 + $0x178] sm:$0xf0]  ;;  %v1846_v62 = vld [vmem:[%s3343_s5 + $0x48] sm:$0xf]  ;;  %1459 = vmatpush.bf16.msrb.mxu3 %v1991_v57 }
  0xe0   :  { %v3164_v25 = vor.u32 %v2153_v36, %v1992_v20  ;;  %v1847_v48 = vor.u32 %v2119_v1, %v1846_v62 }
  0xe1   :  { %1368 = vmatmul.bf16.vlgmr.msra.gmra.mxu2 %v3007_v63  ;;  %1387 = vmatmul.bf16.vlgmr.msra.gmra.mxu3 %v3009_v21 }
  0xe2   :  { %1406 = vmatmul.bf16.vlgmr.msrb.gmra.mxu0 %v3007_v63  ;;  %1425 = vmatmul.bf16.vlgmr.msrb.gmra.mxu1 %v3009_v21 }
  0xe3   :  { %1478 = vmatpush.bf16.msra.mxu0 %v3153_v58  ;;  %1497 = vmatpush.bf16.msra.mxu1 %v3164_v25 }
  0xe4   :  { %1441 = vmatpush.bf16.msrb.mxu2 %v1847_v48  ;;  %1460 = vmatpush.bf16.msrb.mxu3 %v1975_v28 }
  0xe7   :  { %1479 = vmatpush.bf16.msra.mxu0 %v3186_v15  ;;  %1498 = vmatpush.bf16.msra.mxu1 %v3197_v12 }
  0xe8   :  { %1442 = vmatpush.bf16.msrb.mxu2 %v1831_v17  ;;  %1461 = vmatpush.bf16.msrb.mxu3 %v1959_v5 }
  0xeb   :  { %1480 = vmatpush.bf16.msra.mxu0 %v1835_v22  ;;  %1499 = vmatpush.bf16.msra.mxu1 %v1963_v13 }
  0xec   :  { %1443 = vmatpush.bf16.msrb.mxu2 %v1815_v2  ;;  %1462 = vmatpush.bf16.msrb.mxu3 %v1943_v38 }
  0xef   :  { %1481 = vmatpush.bf16.msra.mxu0 %v1819_v35  ;;  %1500 = vmatpush.bf16.msra.mxu1 %v1947_v40 }
  0xf0   :  { %2200 = vmatpush.bf16.msra.mxu2 %v3033_v45  ;;  %2208 = vmatpush.bf16.msra.mxu3 %v3041_v8 }
  0xf4   :  { %2201 = vmatpush.bf16.msra.mxu2 %v3063_v3  ;;  %2209 = vmatpush.bf16.msra.mxu3 %v3071_v23 }
  0xf8   :  { %2202 = vmatpush.bf16.msra.mxu2 %v3093_v19  ;;  %2210 = vmatpush.bf16.msra.mxu3 %v3101_v39 }
  0xfc   :  { %2203 = vmatpush.bf16.msra.mxu2 %v3123_v50  ;;  %2211 = vmatpush.bf16.msra.mxu3 %v3131_v47 }
 0x100   :  { %2204 = vmatpush.bf16.msra.mxu2 %v3153_v58  ;;  %2212 = vmatpush.bf16.msra.mxu3 %v3164_v25 }
 0x104   :  { %2205 = vmatpush.bf16.msra.mxu2 %v3186_v15  ;;  %2213 = vmatpush.bf16.msra.mxu3 %v3197_v12 }
 0x108   :  { %2206 = vmatpush.bf16.msra.mxu2 %v1835_v22  ;;  %2214 = vmatpush.bf16.msra.mxu3 %v1963_v13 }
 0x10c   :  { %v932_v44 = vpop.f32.mrf.mxu0  ;;  %v951_v41 = vpop.f32.mrf.mxu1  ;;  %2207 = vmatpush.bf16.msra.mxu2 %v1819_v35  ;;  %2215 = vmatpush.bf16.msra.mxu3 %v1947_v40 }
 0x10d   :  { %v933_v33 = vadd.f32 %v932_v44, %v2999_v32  ;;  %v952_v24 = vadd.f32 %v951_v41, %v3001_v46 }
 0x10f   :  { %v960_v51 = vmax.f32 %v933_v33, 0.0  ;;  %v961_v16 = vmax.f32 %v952_v24, 0.0  ;;  %v2174_v33 = vld [vmem:[%s3345_s6 + $0x10] sm:$0xff] }
 0x111   :  { %v968_v26 = vmin.f32 %v960_v51, 6.0  ;;  %v969_v57 = vmin.f32 %v961_v16, 6.0 }
 0x114   :  { %v934_v52 = vpop.f32.mrf.mxu0  ;;  %v953_v53 = vpop.f32.mrf.mxu1 }
 0x115   :  { %v935_v0 = vadd.f32 %v934_v52, %v2999_v32  ;;  %v954_v55 = vadd.f32 %v953_v53, %v3001_v46 }
 0x117   :  { %v962_v45 = vmax.f32 %v935_v0, 0.0  ;;  %v963_v8 = vmax.f32 %v954_v55, 0.0 }
 0x119   :  { %v970_v36 = vmin.f32 %v962_v45, 6.0  ;;  %v971_v3 = vmin.f32 %v963_v8, 6.0 }
 0x11b   :  { %v974_v23 = vpack.c.bf16 %v970_v36, %v968_v26  ;;  %v975_v20 = vpack.c.bf16 %v971_v3, %v969_v57  ;;  %v2175_v57 = vld [vmem:[%s3345_s6 + $0x18] sm:$0xff] }
 0x11d   :  { %1373 = vmatmul.bf16.gmra.mxu2 %v974_v23  ;;  %1392 = vmatmul.bf16.gmra.mxu3 %v975_v20 }
 0x11e   :  { %1411 = vmatmul.bf16.gmra.mxu0 %v974_v23  ;;  %1430 = vmatmul.bf16.gmra.mxu1 %v975_v20 }
 0x12d   :  { %1444 = vmatmul.bf16.vlgmr.msrb.gmra.mxu2 %v3007_v63  ;;  %1463 = vmatmul.bf16.vlgmr.msrb.gmra.mxu3 %v3009_v21 }
 0x12e   :  { %1482 = vmatmul.bf16.vlgmr.msra.gmra.mxu0 %v3007_v63  ;;  %1501 = vmatmul.bf16.vlgmr.msra.gmra.mxu1 %v3009_v21 }
 0x13d   :  { %1449 = vmatmul.bf16.gmra.mxu2 %v974_v23  ;;  %1468 = vmatmul.bf16.gmra.mxu3 %v975_v20 }
 0x14d   :  { %1487 = vmatmul.bf16.vlgmr.msra.gmra.mxu2 %v974_v23  ;;  %1506 = vmatmul.bf16.vlgmr.msra.gmra.mxu3 %v975_v20 }
 0x15f   :  { %v1407_v32 = vpop.f32.mrf.mxu0  ;;  %v1426_v46 = vpop.f32.mrf.mxu1 }
 0x160   :  { %v1427_v10 = vadd.f32 %v1426_v46, %v1407_v32 }
 0x164   :  { %v1369_v19 = vpop.f32.mrf.mxu2  ;;  %v1388_v39 = vpop.f32.mrf.mxu3 }
 0x165   :  { %v1389_v14 = vadd.f32 %v1388_v39, %v1369_v19 }
 0x167   :  { %v1409_v50 = vpop.f32.mrf.mxu0  ;;  %v1428_v47 = vpop.f32.mrf.mxu1 }
 0x168   :  { %v1429_v34 = vadd.f32 %v1428_v47, %v1409_v50 }
 0x16a   :  { %v1521_v12 = vpack.c.bf16 %v1429_v34, %v1427_v10 }
 0x16c   :  { %v1371_v58 = vpop.f32.mrf.mxu2  ;;  %v1390_v62 = vpop.f32.mrf.mxu3 }
 0x16d   :  { %v1391_v56 = vadd.f32 %v1390_v62, %v1371_v58 }
 0x16f   :  { %v1520_v17 = vpack.c.bf16 %v1391_v56, %v1389_v14 }
 0x19b   :  { %v1412_v25 = vpop.f32.mrf.mxu0  ;;  %v1431_v1 = vpop.f32.mrf.mxu1 }
 0x19c   :  { %v1432_v28 = vadd.f32 %v1431_v1, %v1412_v25 }
 0x1a0   :  { %v1374_v4 = vpop.f32.mrf.mxu2  ;;  %v1393_v6 = vpop.f32.mrf.mxu3 }
 0x1a1   :  { %v1394_v42 = vadd.f32 %v1393_v6, %v1374_v4 }
 0x1a3   :  { %v1414_v48 = vpop.f32.mrf.mxu0  ;;  %v1433_v63 = vpop.f32.mrf.mxu1 }
 0x1a4   :  { %v1434_v21 = vadd.f32 %v1433_v63, %v1414_v48 }
 0x1a6   :  { %v1525_v7 = vpack.c.bf16 %v1434_v21, %v1432_v28 }
 0x1a8   :  { %1596 = vmatpush.bf16.msrb.mxu3 %v1525_v7  ;;  %v1376_v15 = vpop.f32.mrf.mxu2  ;;  %v1395_v9 = vpop.f32.mrf.mxu3 }
 0x1a9   :  { %v1396_v11 = vadd.f32 %v1395_v9, %v1376_v15 }
 0x1ab   :  { %v1524_v43 = vpack.c.bf16 %v1396_v11, %v1394_v42  ;;  %v1483_v2 = vpop.f32.mrf.mxu0  ;;  %v1502_v38 = vpop.f32.mrf.mxu1 }
 0x1ac   :  { %1597 = vmatpush.bf16.msrb.mxu3 %v1521_v12  ;;  %v1503_v8 = vadd.f32 %v1502_v38, %v1483_v2 }
 0x1ad   :  { %1567 = vmatpush.bf16.msrb.mxu2 %v1524_v43 }
 0x1af   :  { %2080 = vmatmul.msk.bf16.vlgmr.msrb.gmra.mxu3 %vm1548_vm4, %v2172_v27 }
 0x1b0   :  { %v1445_v18 = vpop.f32.mrf.mxu2  ;;  %v1464_v59 = vpop.f32.mrf.mxu3 }
 0x1b1   :  { %1568 = vmatpush.bf16.msrb.mxu2 %v1520_v17  ;;  %v1465_v35 = vadd.f32 %v1464_v59, %v1445_v18 }
 0x1b3   :  { %v1485_v24 = vpop.f32.mrf.mxu0  ;;  %v1504_v52 = vpop.f32.mrf.mxu1 }
 0x1b4   :  { %2076 = vmatmul.msk.bf16.vlgmr.msrb.gmra.mxu2 %vm1548_vm4, %v2172_v27  ;;  %v1505_v55 = vadd.f32 %v1504_v52, %v1485_v24 }
 0x1b6   :  { %v1523_v26 = vpack.c.bf16 %v1505_v55, %v1503_v8 }
 0x1b8   :  { %v1447_v5 = vpop.f32.mrf.mxu2  ;;  %v1466_v22 = vpop.f32.mrf.mxu3 }
 0x1b9   :  { %v1467_v60 = vadd.f32 %v1466_v22, %v1447_v5 }
 0x1bb   :  { %v1522_v40 = vpack.c.bf16 %v1467_v60, %v1465_v35 }
 0x1bf   :  { %2081 = vmatmul.msk.bf16.gmra.mxu3 %vm1548_vm4, %v2173_v61 }
 0x1c0   :  { %v1450_v54 = vpop.f32.mrf.mxu2  ;;  %v1469_v49 = vpop.f32.mrf.mxu3 }
 0x1c1   :  { %v1470_v31 = vadd.f32 %v1469_v49, %v1450_v54 }
 0x1c4   :  { %2077 = vmatmul.msk.bf16.gmra.mxu2 %vm1548_vm4, %v2173_v61 }
 0x1c8   :  { %v1452_v13 = vpop.f32.mrf.mxu2  ;;  %v1471_v30 = vpop.f32.mrf.mxu3 }
 0x1c9   :  { %v1472_v37 = vadd.f32 %v1471_v30, %v1452_v13 }
 0x1cb   :  { %v1526_v29 = vpack.c.bf16 %v1472_v37, %v1470_v31 }
 0x1cd   :  { %1625 = vmatpush.bf16.msrb.mxu0 %v1526_v29 }
 0x1cf   :  { %2082 = vmatmul.msk.bf16.gmra.mxu3 %vm1548_vm4, %v2174_v33 }
 0x1d0   :  { %v1488_v44 = vpop.f32.mrf.mxu2  ;;  %v1507_v41 = vpop.f32.mrf.mxu3 }
 0x1d1   :  { %1626 = vmatpush.bf16.msrb.mxu0 %v1522_v40  ;;  %v1508_v16 = vadd.f32 %v1507_v41, %v1488_v44 }
 0x1d4   :  { %2084 = vmatmul.msk.bf16.vlgmr.msrb.gmra.mxu0 %vm1548_vm4, %v2172_v27  ;;  %2078 = vmatmul.msk.bf16.gmra.mxu2 %vm1548_vm4, %v2174_v33 }
 0x1d8   :  { %v1490_v53 = vpop.f32.mrf.mxu2  ;;  %v1509_v51 = vpop.f32.mrf.mxu3 }
 0x1d9   :  { %v1510_v0 = vadd.f32 %v1509_v51, %v1490_v53 }
 0x1db   :  { %v1527_v45 = vpack.c.bf16 %v1510_v0, %v1508_v16 }
 0x1dd   :  { %1654 = vmatpush.bf16.msrb.mxu1 %v1527_v45 }
 0x1df   :  { %2083 = vmatmul.msk.bf16.gmra.mxu3 %vm1548_vm4, %v2175_v57 }
 0x1e1   :  { %1655 = vmatpush.bf16.msrb.mxu1 %v1523_v26 }
 0x1e4   :  { %2088 = vmatmul.msk.bf16.vlgmr.msrb.gmra.mxu1 %vm1548_vm4, %v2172_v27  ;;  %2085 = vmatmul.msk.bf16.gmra.mxu0 %vm1548_vm4, %v2173_v61 }
 0x1e5   :  { %2079 = vmatmul.msk.bf16.gmra.mxu2 %vm1548_vm4, %v2175_v57 }
 0x1f4   :  { %2089 = vmatmul.msk.bf16.gmra.mxu1 %vm1548_vm4, %v2173_v61  ;;  %2086 = vmatmul.msk.bf16.gmra.mxu0 %vm1548_vm4, %v2174_v33 }
 0x204   :  { %2090 = vmatmul.msk.bf16.gmra.mxu1 %vm1548_vm4, %v2174_v33  ;;  %2087 = vmatmul.msk.bf16.gmra.mxu0 %vm1548_vm4, %v2175_v57 }
 0x214   :  { %2091 = vmatmul.msk.bf16.gmra.mxu1 %vm1548_vm4, %v2175_v57 }
 0x232   :  { %v1599_v3 = vpop.f32.mrf.mxu3 }
 0x237   :  { %v1570_v36 = vpop.f32.mrf.mxu2 }
 0x238   :  { %v1677_v23 = vpack.c.bf16 %v1599_v3, %v1570_v36 }
 0x23a   :  { %1693 = vst [vmem:[%s3346_s7] sm:$0xff] %v1677_v23  ;;  %v1601_v32 = vpop.f32.mrf.mxu3 }
 0x23f   :  { %v1572_v20 = vpop.f32.mrf.mxu2 }
 0x240   :  { %v1679_v46 = vpack.c.bf16 %v1601_v32, %v1572_v20 }
 0x242   :  { %1695 = vst [vmem:[%s3346_s7 + $0x10] sm:$0xff] %v1679_v46  ;;  %v1604_v39 = vpop.f32.mrf.mxu3 }
 0x247   :  { %v1575_v19 = vpop.f32.mrf.mxu2 }
 0x248   :  { %v1681_v50 = vpack.c.bf16 %v1604_v39, %v1575_v19 }
 0x24a   :  { %1697 = vst [vmem:[%s3346_s7 + $0x20] sm:$0xff] %v1681_v50  ;;  %v1606_v58 = vpop.f32.mrf.mxu3 }
 0x24f   :  { %v1577_v47 = vpop.f32.mrf.mxu2 }
 0x250   :  { %v1683_v25 = vpack.c.bf16 %v1606_v58, %v1577_v47 }
 0x251   :  { %v1628_v62 = vpop.f32.mrf.mxu0 }
 0x252   :  { %1699 = vst [vmem:[%s3346_s7 + $0x30] sm:$0xff] %v1683_v25  ;;  %v1609_v4 = vpop.f32.mrf.mxu3 }
 0x257   :  { %v1580_v1 = vpop.f32.mrf.mxu2 }
 0x258   :  { %v1685_v6 = vpack.c.bf16 %v1609_v4, %v1580_v1 }
 0x259   :  { %v1630_v48 = vpop.f32.mrf.mxu0 }
 0x25a   :  { %1701 = vst [vmem:[%s3346_s7 + $0x40] sm:$0xff] %v1685_v6  ;;  %v1611_v34 = vpop.f32.mrf.mxu3 }
 0x25f   :  { %v1582_v21 = vpop.f32.mrf.mxu2 }
 0x260   :  { %v1687_v7 = vpack.c.bf16 %v1611_v34, %v1582_v21 }
 0x261   :  { %v1657_v63 = vpop.f32.mrf.mxu1  ;;  %v1633_v10 = vpop.f32.mrf.mxu0 }
 0x262   :  { %v1678_v28 = vpack.c.bf16 %v1657_v63, %v1628_v62  ;;  %1703 = vst [vmem:[%s3346_s7 + $0x50] sm:$0xff] %v1687_v7  ;;  %v1614_v11 = vpop.f32.mrf.mxu3 }
 0x264   :  { %1694 = vst [vmem:[%s3346_s7 + $0x8] sm:$0xff] %v1678_v28 }
 0x268   :  { %v1585_v42 = vpop.f32.mrf.mxu2 }
 0x269   :  { %v1659_v15 = vpop.f32.mrf.mxu1  ;;  %v1689_v12 = vpack.c.bf16 %v1614_v11, %v1585_v42  ;;  %v1635_v43 = vpop.f32.mrf.mxu0 }
 0x26a   :  { %v1680_v9 = vpack.c.bf16 %v1659_v15, %v1630_v48  ;;  %v1616_v18 = vpop.f32.mrf.mxu3 }
 0x26b   :  { %1705 = vst [vmem:[%s3346_s7 + $0x60] sm:$0xff] %v1689_v12 }
 0x26c   :  { %1696 = vst [vmem:[%s3346_s7 + $0x18] sm:$0xff] %v1680_v9 }
 0x270   :  { %v1587_v17 = vpop.f32.mrf.mxu2 }
 0x271   :  { %v1662_v56 = vpop.f32.mrf.mxu1  ;;  %v1691_v59 = vpack.c.bf16 %v1616_v18, %v1587_v17  ;;  %v1638_v22 = vpop.f32.mrf.mxu0 }
 0x272   :  { %v1682_v14 = vpack.c.bf16 %v1662_v56, %v1633_v10 }
 0x273   :  { %1707 = vst [vmem:[%s3346_s7 + $0x70] sm:$0xff] %v1691_v59 }
 0x274   :  { %1698 = vst [vmem:[%s3346_s7 + $0x28] sm:$0xff] %v1682_v14 }
 0x279   :  { %v1664_v27 = vpop.f32.mrf.mxu1  ;;  %v1640_v61 = vpop.f32.mrf.mxu0 }
 0x27a   :  { %v1684_v5 = vpack.c.bf16 %v1664_v27, %v1635_v43 }
 0x27c   :  { %1700 = vst [vmem:[%s3346_s7 + $0x38] sm:$0xff] %v1684_v5 }
 0x281   :  { %v1667_v54 = vpop.f32.mrf.mxu1  ;;  %v1643_v31 = vpop.f32.mrf.mxu0 }
 0x282   :  { %v1686_v49 = vpack.c.bf16 %v1667_v54, %v1638_v22 }
 0x284   :  { %1702 = vst [vmem:[%s3346_s7 + $0x48] sm:$0xff] %v1686_v49 }
 0x289   :  { %v1669_v13 = vpop.f32.mrf.mxu1  ;;  %v1645_v29 = vpop.f32.mrf.mxu0 }
 0x28a   :  { %v1688_v30 = vpack.c.bf16 %v1669_v13, %v1640_v61 }
 0x28c   :  { %1704 = vst [vmem:[%s3346_s7 + $0x58] sm:$0xff] %v1688_v30 }
 0x291   :  { %v1672_v37 = vpop.f32.mrf.mxu1 }
 0x292   :  { %v1690_v60 = vpack.c.bf16 %v1672_v37, %v1643_v31 }
 0x294   :  { %1706 = vst [vmem:[%s3346_s7 + $0x68] sm:$0xff] %v1690_v60 }
 0x299   :  { %v1674_v2 = vpop.f32.mrf.mxu1 }
 0x29a   :  { %v1692_v38 = vpack.c.bf16 %v1674_v2, %v1645_v29 }
 0x29c   :  { %1708 = vst [vmem:[%s3346_s7 + $0x78] sm:$0xff] %v1692_v38 }

</bundles_post_ra>
